<compile_context>
chip_gen: v6e
topology: v6e:2x2x1
jax: 0.10.0
libtpu: 0.0.40
codegen_flags: <defaults>
</compile_context>

<pallas_src>
import functools

import jax
import jax.numpy as jnp
import numpy as np
from jax import lax
from jax.experimental import pallas as pl
from jax.experimental.pallas import tpu as pltpu


# ---------------------------------------------------------------------------
# Tiling
# ---------------------------------------------------------------------------
def _round_up(x, m):
    return (x + m - 1) // m * m


def _choose_tiles(n):
    # MXU/vreg-friendly tiles; pad N up instead of shrinking the tile.
    tm = 128 if n <= 128 else 256
    tk = tm
    n_pad = _round_up(n, max(tm, tk))
    return tm, tk, n_pad


# ---------------------------------------------------------------------------
# Pallas kernel: per-row contribution  where(srcs1==srcs2, row_loss, 0)
# Grid = (row tiles ["parallel"], key-column tiles ["arbitrary"]).
# ---------------------------------------------------------------------------
def _infonce_kernel(q_ref, k1t_ref, k2t_ref, s1r_ref, s2r_ref, s1c_ref, s2c_ref,
                    out_ref, neg_acc, pos_acc,
                    *, inv_temperature, eps, weight_value, tm, tk, n_true):
    i = pl.program_id(0)          # row-tile index
    k = pl.program_id(1)          # key-column-tile index

    @pl.when(k == 0)
    def _():
        neg_acc[...] = jnp.zeros_like(neg_acc)
        pos_acc[...] = jnp.zeros_like(pos_acc)

    # Fold 1/T into the query tile once (reused against every key tile) instead
    # of scaling every (TM, TK) logit tile.
    q = q_ref[...] * jnp.asarray(inv_temperature, q_ref.dtype)       # (TM, E)

    s1r = s1r_ref[...]            # (TM, 1)  srcs1 of the query rows
    s2r = s2r_ref[...]            # (TM, 1)  srcs2 of the query rows
    s1c = s1c_ref[...]            # (1, TK)  srcs1 of this key-column tile
    s2c = s2c_ref[...]            # (1, TK)  srcs2 of this key-column tile

    row_g = i * tm + lax.broadcasted_iota(jnp.int32, (tm, 1), 0)     # global rows
    col_g = k * tk + lax.broadcasted_iota(jnp.int32, (1, tk), 1)     # global cols
    col_valid = col_g < n_true                                       # padding mask

    # MXU: keys are pre-transposed once in the wrapper -> plain MN contraction.
    l1 = jnp.dot(q, k1t_ref[...], preferred_element_type=jnp.float32)  # (TM, TK)
    l2 = jnp.dot(q, k2t_ref[...], preferred_element_type=jnp.float32)  # (TM, TK)

    if weight_value != 1.0:
        # Trace-time specialization: the PyTorch forward uses weight_value=1.0,
        # so this whole branch normally disappears.
        wv = jnp.float32(weight_value)
        l1 = jnp.where(s1r + s1c == 0, l1 * wv, l1)
        l2 = jnp.where(s1r + s2c == 0, l2 * wv, l2)

    e1 = jnp.exp(l1)
    e2 = jnp.exp(l2)

    eq_diag = col_g == row_g                                  # positive slot (col N+row)
    neg1 = col_valid & (s1c != s1r)                           # left half of neg_mask
    neg2 = col_valid & (s2c != s1r) & jnp.logical_not(eq_diag)  # right half

    # where() selects, so exp() overflow in masked-out slots can never leak NaN.
    neg_acc[...] += (jnp.sum(jnp.where(neg1, e1, 0.0), axis=-1, keepdims=True) +
                     jnp.sum(jnp.where(neg2, e2, 0.0), axis=-1, keepdims=True))
    # Positive logit = logit of embs2 at the diagonal column; exactly one
    # key-column tile contributes a non-zero value per row.
    pos_acc[...] += jnp.sum(jnp.where(eq_diag, l2, 0.0), axis=-1, keepdims=True)

    @pl.when(k == pl.num_programs(1) - 1)
    def _():
        pos_logit = pos_acc[...]
        pos = jnp.exp(pos_logit)
        # -log(pos / (pos + neg + eps)) == log(pos + neg + eps) - pos_logit
        row_loss = jnp.log(pos + neg_acc[...] + eps) - pos_logit      # (TM, 1)
        is_pos = s1r == s2r
        out_ref[...] = jnp.where(is_pos, row_loss, 0.0)


def _infonce_rows_pallas(embs1_p, embs2_p, srcs1_p, srcs2_p, temperature, eps,
                         weight_value, tm, tk, n_true):
    n_pad, e = embs1_p.shape
    grid = (n_pad // tm, n_pad // tk)

    kernel = functools.partial(
        _infonce_kernel,
        inv_temperature=float(1.0 / temperature),
        eps=float(eps),
        weight_value=float(weight_value),
        tm=tm, tk=tk, n_true=int(n_true),
    )

    # Pre-transpose the key matrices once in XLA (amortized over all row tiles)
    # so the kernel never transposes a per-step operand.
    k1t = embs1_p.T                      # (E, N_pad)
    k2t = embs2_p.T                      # (E, N_pad)

    s1_col = srcs1_p.reshape(n_pad, 1)
    s2_col = srcs2_p.reshape(n_pad, 1)
    s1_row = srcs1_p.reshape(1, n_pad)
    s2_row = srcs2_p.reshape(1, n_pad)

    q_spec = pl.BlockSpec((tm, e), lambda i, k: (i, 0))     # constant in k -> fetched once/row tile
    key_spec = pl.BlockSpec((e, tk), lambda i, k: (0, k))   # column-tiled keys
    src_row_spec = pl.BlockSpec((tm, 1), lambda i, k: (i, 0))
    src_col_spec = pl.BlockSpec((1, tk), lambda i, k: (0, k))

    per_row = pl.pallas_call(
        kernel,
        out_shape=jax.ShapeDtypeStruct((n_pad, 1), jnp.float32),
        grid_spec=pltpu.PrefetchScalarGridSpec(
            num_scalar_prefetch=0,
            grid=grid,
            in_specs=[q_spec, key_spec, key_spec,
                      src_row_spec, src_row_spec, src_col_spec, src_col_spec],
            out_specs=pl.BlockSpec((tm, 1), lambda i, k: (i, 0)),
            scratch_shapes=[pltpu.VMEM((tm, 1), jnp.float32),   # neg accumulator
                            pltpu.VMEM((tm, 1), jnp.float32)],  # pos-logit accumulator
        ),
        compiler_params=pltpu.CompilerParams(
            # Row-tile axis is independent -> "parallel" (v7x megacore sharding);
            # key-column axis accumulates into scratch -> "arbitrary" (and last).
            dimension_semantics=("parallel", "arbitrary"),
            # Column tiling bounds VMEM, but raise v5e's 16 MiB scoped default
            # to the v6e/v7x default so larger E still fits comfortably.
            vmem_limit_bytes=32 * 1024 * 1024,
        ),
    )(embs1_p, k1t, k2t, s1_col, s2_col, s1_row, s2_row)
    return per_row


# ---------------------------------------------------------------------------
# Module-equivalent wrapper (InfoNCELoss.forward)
# ---------------------------------------------------------------------------
def infonce_loss(embs1, embs2, srcs1, srcs2, temperature, eps=1e-8,
                 weight_value=1.0):
    embs1 = jnp.asarray(embs1)
    embs2 = jnp.asarray(embs2)
    srcs1 = jnp.asarray(srcs1, jnp.int32).reshape(-1)
    srcs2 = jnp.asarray(srcs2, jnp.int32).reshape(-1)
    n, _ = embs1.shape

    is_pos = srcs1 == srcs2
    n_pos = jnp.sum(is_pos)

    # Number of distinct srcs1 values among positive pairs (torch .unique()),
    # via an O(N log N) sort — no N x N boolean matrices.
    order = jnp.lexsort((srcs1, (~is_pos).astype(jnp.int32)))   # positives first
    s_sorted = srcs1[order]
    p_sorted = is_pos[order]
    is_first = jnp.arange(n) == 0
    new_val = is_first | (s_sorted != jnp.roll(s_sorted, 1))
    n_pos_srcs = jnp.sum(p_sorted & new_val)

    # Pad N up to the tile size: zero embedding rows + sentinel source ids.
    # Padded rows never count as positive (sentinels differ) and padded columns
    # are excluded from the negative sums by the in-kernel col < n_true mask.
    tm, tk, n_pad = _choose_tiles(n)
    pad = n_pad - n
    embs1_p = jnp.pad(embs1, ((0, pad), (0, 0)))
    embs2_p = jnp.pad(embs2, ((0, pad), (0, 0)))
    srcs1_p = jnp.pad(srcs1, (0, pad), constant_values=-2_000_000_000)
    srcs2_p = jnp.pad(srcs2, (0, pad), constant_values=-2_000_000_001)

    per_row = _infonce_rows_pallas(embs1_p, embs2_p, srcs1_p, srcs2_p,
                                   temperature, eps, weight_value, tm, tk, n)
    num = jnp.sum(per_row)
    den = jnp.maximum(n_pos.astype(jnp.float32), 1.0)
    loss = num / den

    # TODO(synk): the PyTorch module returns early (Python-level) on the
    # degenerate cases; here it is a data-dependent select in the wrapper.
    degenerate = (n_pos == 0) | (n_pos_srcs == 1)
    return jnp.where(degenerate, jnp.float32(0.0), loss)


# ---------------------------------------------------------------------------
# Pure-JAX reference (mirrors the PyTorch forward) for the self-check.
# ---------------------------------------------------------------------------
def _get_masks_jax(srcs1, srcs2):
    n = srcs1.shape[0]
    eye = jnp.eye(n, dtype=bool)
    pos_mask = jnp.concatenate([jnp.zeros((n, n), dtype=bool), eye], axis=1)
    srcs = jnp.concatenate([srcs1, srcs2])
    mask = jnp.concatenate([eye, eye], axis=1)
    mask = mask | (srcs[None, :] == srcs1[:, None])
    return pos_mask, ~mask


def _get_weight_jax(srcs1, srcs2, weight_value=1.0):
    srcs = jnp.concatenate([srcs1, srcs2])
    is_pair = (srcs1[:, None] + srcs[None, :]) == 0
    return jnp.where(is_pair, jnp.float32(weight_value), jnp.float32(1.0))


def infonce_loss_ref(embs1, embs2, srcs1, srcs2, temperature, eps=1e-8):
    is_pos = srcs1 == srcs2
    embs = jnp.concatenate([embs1, embs2], axis=0)
    sim = (embs1 @ embs.T) / temperature
    sim = sim * _get_weight_jax(srcs1, srcs2)
    pos_mask, neg_mask = _get_masks_jax(srcs1, srcs2)
    e = jnp.exp(sim)
    pos = jnp.sum(jnp.where(pos_mask, e, 0.0), axis=-1)
    neg = jnp.sum(jnp.where(neg_mask, e, 0.0), axis=-1)
    row_loss = -jnp.log(pos / (pos + neg + eps))
    return jnp.sum(jnp.where(is_pos, row_loss, 0.0)) / jnp.sum(is_pos)


def _unit_normalize(x):
    return x / jnp.linalg.norm(x, axis=-1, keepdims=True)


if __name__ == "__main__":
    temperature = 0.5
    key = jax.random.PRNGKey(0)

    # --- test 1: small batch (single padded tile) ----------------------------
    N1, E1 = 8, 32
    k1, k2, k3, k4 = jax.random.split(key, 4)
    embs1_a = _unit_normalize(jax.random.normal(k1, (N1, E1), dtype=jnp.float32))
    embs2_a = _unit_normalize(jax.random.normal(k2, (N1, E1), dtype=jnp.float32))
    srcs1_a = jnp.array([0, 1, 2, 0, 1, 2, 3, 4], dtype=jnp.int32)
    srcs2_a = jnp.array([0, 1, 5, 0, 6, 2, 7, 8], dtype=jnp.int32)

    loss_a = jax.block_until_ready(
        infonce_loss(embs1_a, embs2_a, srcs1_a, srcs2_a, temperature))
    ref_a = infonce_loss_ref(embs1_a, embs2_a, srcs1_a, srcs2_a, temperature)
    np.testing.assert_allclose(np.asarray(loss_a), np.asarray(ref_a),
                               rtol=1e-4, atol=1e-5)

    # --- test 2: non-divisible N, multiple row & key-column tiles ------------
    N2, E2 = 300, 64          # pads to 512 -> grid (2, 2): exercises the
    idx = jnp.arange(N2)      # k-accumulator, multi-row tiles and padding.
    embs1_b = _unit_normalize(jax.random.normal(k3, (N2, E2), dtype=jnp.float32))
    embs2_b = _unit_normalize(jax.random.normal(k4, (N2, E2), dtype=jnp.float32))
    srcs1_b = (idx % 7).astype(jnp.int32)
    srcs2_b = jnp.where(idx % 3 == 0, srcs1_b, srcs1_b + 50).astype(jnp.int32)

    loss_b = jax.block_until_ready(
        infonce_loss(embs1_b, embs2_b, srcs1_b, srcs2_b, temperature))
    ref_b = infonce_loss_ref(embs1_b, embs2_b, srcs1_b, srcs2_b, temperature)
    np.testing.assert_allclose(np.asarray(loss_b), np.asarray(ref_b),
                               rtol=1e-4, atol=1e-5)

    # --- test 3: degenerate (no positive pairs) -> 0 --------------------------
    srcs1_d = jnp.arange(1, N1 + 1, dtype=jnp.int32)
    srcs2_d = srcs1_d + 100
    loss_d = jax.block_until_ready(
        infonce_loss(embs1_a, embs2_a, srcs1_d, srcs2_d, temperature))
    np.testing.assert_allclose(np.asarray(loss_d), 0.0, atol=0.0)

    print("KERNEL_OK")
</pallas_src>

<mosaic_0001>
module attributes {stable_mosaic.version = 11 : i64} {
  func.func @_infonce_kernel(%arg0: i32, %arg1: i32, %arg2: memref<128x32xf32, #tpu.memory_space<vmem>>, %arg3: memref<32x128xf32, #tpu.memory_space<vmem>>, %arg4: memref<32x128xf32, #tpu.memory_space<vmem>>, %arg5: memref<128x1xi32, #tpu.memory_space<vmem>>, %arg6: memref<128x1xi32, #tpu.memory_space<vmem>>, %arg7: memref<1x128xi32, #tpu.memory_space<vmem>>, %arg8: memref<1x128xi32, #tpu.memory_space<vmem>>, %arg9: memref<128x1xf32, #tpu.memory_space<vmem>>, %arg10: memref<128x1xf32, #tpu.memory_space<vmem>>, %arg11: memref<128x1xf32, #tpu.memory_space<vmem>>) attributes {dimension_semantics = [#tpu.dimension_semantics<parallel>, #tpu.dimension_semantics<arbitrary>], iteration_bounds = array<i64: 1, 1>, scalar_prefetch = 0 : i64, scratch_operands = 2 : i64, tpu.core_type = #tpu.core_type<tc>, window_params = [{transform_indices = @transform_0, window_bounds = array<i64: 128, 32>}, {transform_indices = @transform_1, window_bounds = array<i64: 32, 128>}, {transform_indices = @transform_2, window_bounds = array<i64: 32, 128>}, {transform_indices = @transform_3, window_bounds = array<i64: 128, 1>}, {transform_indices = @transform_4, window_bounds = array<i64: 128, 1>}, {transform_indices = @transform_5, window_bounds = array<i64: 1, 128>}, {transform_indices = @transform_6, window_bounds = array<i64: 1, 128>}, {transform_indices = @transform_7, window_bounds = array<i64: 128, 1>}]} {
    %c0_i32 = arith.constant 0 : i32
    %0 = arith.cmpi eq, %arg1, %c0_i32 : i32
    %1 = arith.extui %0 : i1 to i32
    %c0_i32_0 = arith.constant 0 : i32
    %2 = arith.cmpi ne, %1, %c0_i32_0 : i32
    scf.if %2 {
      %cst_34 = arith.constant 0.000000e+00 : f32
      %63 = vector.broadcast %cst_34 : f32 to vector<128x1xf32>
      %c0_35 = arith.constant 0 : index
      %c0_36 = arith.constant 0 : index
      %64 = vector.load %arg10[%c0_35, %c0_36] : memref<128x1xf32, #tpu.memory_space<vmem>>, vector<128x1xf32>
      tpu.vector_store %arg10[%c0_35, %c0_36], %63 {strides = array<i32>} : memref<128x1xf32, #tpu.memory_space<vmem>>, vector<128x1xf32>,
      %cst_37 = arith.constant 0.000000e+00 : f32
      %65 = vector.broadcast %cst_37 : f32 to vector<128x1xf32>
      %c0_38 = arith.constant 0 : index
      %c0_39 = arith.constant 0 : index
      %66 = vector.load %arg11[%c0_38, %c0_39] : memref<128x1xf32, #tpu.memory_space<vmem>>, vector<128x1xf32>
      tpu.vector_store %arg11[%c0_38, %c0_39], %65 {strides = array<i32>} : memref<128x1xf32, #tpu.memory_space<vmem>>, vector<128x1xf32>,
    } else {
    }
    %c0 = arith.constant 0 : index
    %c0_1 = arith.constant 0 : index
    %3 = vector.load %arg2[%c0, %c0_1] : memref<128x32xf32, #tpu.memory_space<vmem>>, vector<128x32xf32>
    %cst = arith.constant 2.000000e+00 : f32
    %4 = vector.broadcast %cst : f32 to vector<128x32xf32>
    %5 = arith.mulf %3, %4 : vector<128x32xf32>
    %c0_2 = arith.constant 0 : index
    %c0_3 = arith.constant 0 : index
    %6 = vector.load %arg5[%c0_2, %c0_3] : memref<128x1xi32, #tpu.memory_space<vmem>>, vector<128x1xi32>
    %c0_4 = arith.constant 0 : index
    %c0_5 = arith.constant 0 : index
    %7 = vector.load %arg6[%c0_4, %c0_5] : memref<128x1xi32, #tpu.memory_space<vmem>>, vector<128x1xi32>
    %c0_6 = arith.constant 0 : index
    %c0_7 = arith.constant 0 : index
    %8 = vector.load %arg7[%c0_6, %c0_7] : memref<1x128xi32, #tpu.memory_space<vmem>>, vector<1x128xi32>
    %c0_8 = arith.constant 0 : index
    %c0_9 = arith.constant 0 : index
    %9 = vector.load %arg8[%c0_8, %c0_9] : memref<1x128xi32, #tpu.memory_space<vmem>>, vector<1x128xi32>
    %c128_i32 = arith.constant 128 : i32
    %10 = arith.muli %arg0, %c128_i32 : i32
    %11 = tpu.iota {dimensions = array<i32: 0>} : vector<128x1xi32>
    %12 = vector.broadcast %10 : i32 to vector<128x1xi32>
    %13 = arith.addi %12, %11 : vector<128x1xi32>
    %c128_i32_10 = arith.constant 128 : i32
    %14 = arith.muli %arg1, %c128_i32_10 : i32
    %15 = tpu.iota {dimensions = array<i32: 1>} : vector<1x128xi32>
    %16 = vector.broadcast %14 : i32 to vector<1x128xi32>
    %17 = arith.addi %16, %15 : vector<1x128xi32>
    %c8_i32 = arith.constant 8 : i32
    %18 = vector.broadcast %c8_i32 : i32 to vector<1x128xi32>
    %19 = arith.cmpi slt, %17, %18 : vector<1x128xi32>
    %c0_11 = arith.constant 0 : index
    %c0_12 = arith.constant 0 : index
    %20 = vector.load %arg3[%c0_11, %c0_12] : memref<32x128xf32, #tpu.memory_space<vmem>>, vector<32x128xf32>
    %cst_13 = arith.constant dense<0.000000e+00> : vector<128x128xf32>
    %21 = tpu.matmul %5, %20, %cst_13 {dimension_numbers = #tpu.dot_dimension_numbers<[1], [0], [0], [1], [0, 0, 1, 1], [], []>} : vector<128x32xf32>, vector<32x128xf32>, vector<128x128xf32> -> vector<128x128xf32>
    %c0_14 = arith.constant 0 : index
    %c0_15 = arith.constant 0 : index
    %22 = vector.load %arg4[%c0_14, %c0_15] : memref<32x128xf32, #tpu.memory_space<vmem>>, vector<32x128xf32>
    %cst_16 = arith.constant dense<0.000000e+00> : vector<128x128xf32>
    %23 = tpu.matmul %5, %22, %cst_16 {dimension_numbers = #tpu.dot_dimension_numbers<[1], [0], [0], [1], [0, 0, 1, 1], [], []>} : vector<128x32xf32>, vector<32x128xf32>, vector<128x128xf32> -> vector<128x128xf32>
    %24 = math.exp %21 : vector<128x128xf32>
    %25 = math.exp %23 : vector<128x128xf32>
    %26 = vector.broadcast %17 : vector<1x128xi32> to vector<128x128xi32>
    %27 = vector.broadcast %13 : vector<128x1xi32> to vector<128x128xi32>
    %28 = arith.cmpi eq, %26, %27 : vector<128x128xi32>
    %29 = vector.broadcast %8 : vector<1x128xi32> to vector<128x128xi32>
    %30 = vector.broadcast %6 : vector<128x1xi32> to vector<128x128xi32>
    %31 = arith.cmpi ne, %29, %30 : vector<128x128xi32>
    %32 = vector.broadcast %19 : vector<1x128xi1> to vector<128x128xi1>
    %33 = arith.andi %32, %31 : vector<128x128xi1>
    %34 = vector.broadcast %9 : vector<1x128xi32> to vector<128x128xi32>
    %35 = vector.broadcast %6 : vector<128x1xi32> to vector<128x128xi32>
    %36 = arith.cmpi ne, %34, %35 : vector<128x128xi32>
    %37 = vector.broadcast %19 : vector<1x128xi1> to vector<128x128xi1>
    %38 = arith.andi %37, %36 : vector<128x128xi1>
    %cst_17 = arith.constant dense<true> : vector<128x128xi1>
    %39 = arith.xori %28, %cst_17 : vector<128x128xi1>
    %40 = arith.andi %38, %39 : vector<128x128xi1>
    %c0_18 = arith.constant 0 : index
    %c0_19 = arith.constant 0 : index
    %41 = vector.load %arg10[%c0_18, %c0_19] : memref<128x1xf32, #tpu.memory_space<vmem>>, vector<128x1xf32>
    %cst_20 = arith.constant 0.000000e+00 : f32
    %42 = vector.broadcast %cst_20 : f32 to vector<128x128xf32>
    %43 = arith.select %33, %24, %42 : vector<128x128xi1>, vector<128x128xf32>
    %cst_21 = arith.constant dense<0.000000e+00> : vector<128xf32>
    %44 = vector.multi_reduction <add>, %43, %cst_21 [1] : vector<128x128xf32> to vector<128xf32>
    %45 = vector.shape_cast %44 : vector<128xf32> to vector<128x1xf32>
    %cst_22 = arith.constant 0.000000e+00 : f32
    %46 = vector.broadcast %cst_22 : f32 to vector<128x128xf32>
    %47 = arith.select %40, %25, %46 : vector<128x128xi1>, vector<128x128xf32>
    %cst_23 = arith.constant dense<0.000000e+00> : vector<128xf32>
    %48 = vector.multi_reduction <add>, %47, %cst_23 [1] : vector<128x128xf32> to vector<128xf32>
    %49 = vector.shape_cast %48 : vector<128xf32> to vector<128x1xf32>
    %50 = arith.addf %45, %49 : vector<128x1xf32>
    %51 = arith.addf %41, %50 : vector<128x1xf32>
    %c0_24 = arith.constant 0 : index
    %c0_25 = arith.constant 0 : index
    %52 = vector.load %arg10[%c0_24, %c0_25] : memref<128x1xf32, #tpu.memory_space<vmem>>, vector<128x1xf32>
    tpu.vector_store %arg10[%c0_24, %c0_25], %51 {strides = array<i32>} : memref<128x1xf32, #tpu.memory_space<vmem>>, vector<128x1xf32>,
    %c0_26 = arith.constant 0 : index
    %c0_27 = arith.constant 0 : index
    %53 = vector.load %arg11[%c0_26, %c0_27] : memref<128x1xf32, #tpu.memory_space<vmem>>, vector<128x1xf32>
    %cst_28 = arith.constant 0.000000e+00 : f32
    %54 = vector.broadcast %cst_28 : f32 to vector<128x128xf32>
    %55 = arith.select %28, %23, %54 : vector<128x128xi1>, vector<128x128xf32>
    %cst_29 = arith.constant dense<0.000000e+00> : vector<128xf32>
    %56 = vector.multi_reduction <add>, %55, %cst_29 [1] : vector<128x128xf32> to vector<128xf32>
    %57 = vector.shape_cast %56 : vector<128xf32> to vector<128x1xf32>
    %58 = arith.addf %53, %57 : vector<128x1xf32>
    %c0_30 = arith.constant 0 : index
    %c0_31 = arith.constant 0 : index
    %59 = vector.load %arg11[%c0_30, %c0_31] : memref<128x1xf32, #tpu.memory_space<vmem>>, vector<128x1xf32>
    tpu.vector_store %arg11[%c0_30, %c0_31], %58 {strides = array<i32>} : memref<128x1xf32, #tpu.memory_space<vmem>>, vector<128x1xf32>,
    %c0_i32_32 = arith.constant 0 : i32
    %60 = arith.cmpi eq, %arg1, %c0_i32_32 : i32
    %61 = arith.extui %60 : i1 to i32
    %c0_i32_33 = arith.constant 0 : i32
    %62 = arith.cmpi ne, %61, %c0_i32_33 : i32
    scf.if %62 {
      %c0_34 = arith.constant 0 : index
      %c0_35 = arith.constant 0 : index
      %63 = vector.load %arg11[%c0_34, %c0_35] : memref<128x1xf32, #tpu.memory_space<vmem>>, vector<128x1xf32>
      %64 = math.exp %63 : vector<128x1xf32>
      %c0_36 = arith.constant 0 : index
      %c0_37 = arith.constant 0 : index
      %65 = vector.load %arg10[%c0_36, %c0_37] : memref<128x1xf32, #tpu.memory_space<vmem>>, vector<128x1xf32>
      %66 = arith.addf %64, %65 : vector<128x1xf32>
      %cst_38 = arith.constant 9.99999993E-9 : f32
      %67 = vector.broadcast %cst_38 : f32 to vector<128x1xf32>
      %68 = arith.addf %66, %67 : vector<128x1xf32>
      %69 = math.log %68 : vector<128x1xf32>
      %70 = arith.subf %69, %63 : vector<128x1xf32>
      %71 = arith.cmpi eq, %6, %7 : vector<128x1xi32>
      %cst_39 = arith.constant 0.000000e+00 : f32
      %72 = vector.broadcast %cst_39 : f32 to vector<128x1xf32>
      %73 = arith.select %71, %70, %72 : vector<128x1xi1>, vector<128x1xf32>
      %c0_40 = arith.constant 0 : index
      %c0_41 = arith.constant 0 : index
      %74 = vector.load %arg9[%c0_40, %c0_41] : memref<128x1xf32, #tpu.memory_space<vmem>>, vector<128x1xf32>
      tpu.vector_store %arg9[%c0_40, %c0_41], %73 {strides = array<i32>} : memref<128x1xf32, #tpu.memory_space<vmem>>, vector<128x1xf32>,
    } else {
    }
    return
  }
  func.func @transform_0(%arg0: i32, %arg1: i32) -> (i32, i32) {
    %c0_i32 = arith.constant 0 : i32
    %c0_i32_0 = arith.constant 0 : i32
    return %arg0, %c0_i32 : i32, i32
  }
  func.func @transform_1(%arg0: i32, %arg1: i32) -> (i32, i32) {
    %c0_i32 = arith.constant 0 : i32
    %c0_i32_0 = arith.constant 0 : i32
    return %c0_i32, %arg1 : i32, i32
  }
  func.func @transform_2(%arg0: i32, %arg1: i32) -> (i32, i32) {
    %c0_i32 = arith.constant 0 : i32
    %c0_i32_0 = arith.constant 0 : i32
    return %c0_i32, %arg1 : i32, i32
  }
  func.func @transform_3(%arg0: i32, %arg1: i32) -> (i32, i32) {
    %c0_i32 = arith.constant 0 : i32
    %c0_i32_0 = arith.constant 0 : i32
    return %arg0, %c0_i32 : i32, i32
  }
  func.func @transform_4(%arg0: i32, %arg1: i32) -> (i32, i32) {
    %c0_i32 = arith.constant 0 : i32
    %c0_i32_0 = arith.constant 0 : i32
    return %arg0, %c0_i32 : i32, i32
  }
  func.func @transform_5(%arg0: i32, %arg1: i32) -> (i32, i32) {
    %c0_i32 = arith.constant 0 : i32
    %c0_i32_0 = arith.constant 0 : i32
    return %c0_i32, %arg1 : i32, i32
  }
  func.func @transform_6(%arg0: i32, %arg1: i32) -> (i32, i32) {
    %c0_i32 = arith.constant 0 : i32
    %c0_i32_0 = arith.constant 0 : i32
    return %c0_i32, %arg1 : i32, i32
  }
  func.func @transform_7(%arg0: i32, %arg1: i32) -> (i32, i32) {
    %c0_i32 = arith.constant 0 : i32
    %c0_i32_0 = arith.constant 0 : i32
    return %arg0, %c0_i32 : i32, i32
  }
}

</mosaic_0001>

<bundles_post_ra>
// kernel: tpu_custom_call.1
= control target key start
LH: loop header
LB: loop body
LE: loop exit
PB: predicated region body
PF: predicated region fallthrough
CT: control target
= control target key end

     0   :  { %v1491_v3 = vmov 0   ;;  %vm174_vm0 = vcmask 261120   ;;  %vm2706_vm9 = vmmov 1   ;;  %vm2687_vm13 = vcmask 7168   ;;  %s2679_s1 = inlined_call_operand.vmem [shape: f32[32,128], index: 1, kind: input, shape index: {}]   ;;  %s2680_s2 = inlined_call_operand.vmem [shape: f32[32,128], index: 2, kind: input, shape index: {}]   ;;  %s2681_s0 = inlined_call_operand.vmem [shape: f32[128,32], index: 0, kind: input, shape index: {}]   ;;  %s2682_s3 = inlined_call_operand.vmem [shape: s32[128,1], index: 3, kind: input, shape index: {}]   ;;  %s2683_s4 = inlined_call_operand.vmem [shape: s32[128,1], index: 4, kind: input, shape index: {}]   ;;  %s2684_s5 = inlined_call_operand.vmem [shape: s32[1,128], index: 5, kind: input, shape index: {}]   ;;  %s2685_s6 = inlined_call_operand.vmem [shape: s32[1,128], index: 6, kind: input, shape index: {}]   ;;  %s2686_s7 = inlined_call_operand.vmem [shape: f32[128,1], index: 7, kind: output, shape index: {}]  }
   0x1   :  { %v173_v0 = vld [vmem:[%s2679_s1 + $0x18] sm:$0xff]  ;;  %v172_v2 = vld [vmem:[%s2679_s1 + $0x10] sm:$0xff]  ;;  %1348 = vset.pattern.permute.xlu0 %v1491_v3  ;;  %1349 = vset.pattern.permute.xlu1 %v1491_v3  ;;  %v171_v5 = vld [vmem:[%s2679_s1 + $0x8] sm:$0xff] }
   0x2   :  { %v371_v1 = vld [vmem:[%s2680_s2 + $0x18] sm:$0xff]  ;;  %1281 = vmatprep.subr.mxu0 %v173_v0  ;;  %v370_v4 = vld [vmem:[%s2680_s2 + $0x10] sm:$0xff]  ;;  %v369_v6 = vld [vmem:[%s2680_s2 + $0x8] sm:$0xff] }
   0x3   :  { %1313 = vmatprep.subr.mxu1 %v371_v1  ;;  %1282 = vmatpush3.msra.mxu0 %v173_v0  ;;  %v63_v7 = vld [vmem:[%s2681_s0] sm:$0xff]  ;;  %v64_v8 = vld [vmem:[%s2681_s0 + $0x8] sm:$0xff]  ;;  %v65_v12 = vld [vmem:[%s2681_s0 + $0x10] sm:$0xff] }
   0x4   :  { %1314 = vmatpush3.msra.mxu1 %v371_v1  ;;  %1283 = vmatprep.subr.mxu0 %v172_v2  ;;  %v170_v9 = vld [vmem:[%s2679_s1] sm:$0xff]  ;;  %v79_v11 = vmul.f32 2.0, %v63_v7  ;;  %v80_v13 = vmul.f32 2.0, %v64_v8  ;;  %v81_v14 = vmul.f32 2.0, %v65_v12  ;;  %v66_v15 = vld [vmem:[%s2681_s0 + $0x18] sm:$0xff]  ;;  %v97_v19 = vld [vmem:[%s2682_s3 + $0x10] sm:$0xff] }
   0x5   :  { %1315 = vmatprep.subr.mxu1 %v370_v4  ;;  %1284 = vmatpush3.msra.mxu0 %v172_v2  ;;  %v368_v10 = vld [vmem:[%s2680_s2] sm:$0xff]  ;;  %v82_v18 = vmul.f32 2.0, %v66_v15  ;;  %v68_v21 = vld [vmem:[%s2681_s0 + $0x28] sm:$0xff]  ;;  %v69_v22 = vld [vmem:[%s2681_s0 + $0x30] sm:$0xff] }
   0x6   :  { %1316 = vmatpush3.msra.mxu1 %v370_v4  ;;  %1285 = vmatprep.subr.mxu0 %v171_v5  ;;  %v67_v16 = vld [vmem:[%s2681_s0 + $0x20] sm:$0xff]  ;;  %v96_v23 = vld [vmem:[%s2682_s3 + $0x8] sm:$0xff]  ;;  %v98_v24 = vld [vmem:[%s2682_s3 + $0x18] sm:$0xff]  ;;  %v84_v25 = vmul.f32 2.0, %v68_v21  ;;  %v85_v26 = vmul.f32 2.0, %v69_v22  ;;  %v2715_v22 = vmov 0 }
   0x7   :  { %1317 = vmatprep.subr.mxu1 %v369_v6  ;;  %1286 = vmatpush3.msra.mxu0 %v171_v5  ;;  %v95_v17 = vld [vmem:[%s2682_s3] sm:$0xff]  ;;  %v83_v20 = vmul.f32 2.0, %v67_v16  ;;  %v70_v27 = vld [vmem:[%s2681_s0 + $0x38] sm:$0xff]  ;;  %v1613_v30 = vld [vmem:[%s2682_s3 + $0x70] sm:$0xff] }
   0x8   :  { %1318 = vmatpush3.msra.mxu1 %v369_v6  ;;  %1287 = vmatprep.subr.mxu0 %v170_v9  ;;  %v71_v28 = vld [vmem:[%s2681_s0 + $0x40] sm:$0xff]  ;;  %v1618_v31 = vld [vmem:[%s2683_s4 + $0x70] sm:$0xff]  ;;  %v100_v32 = vld [vmem:[%s2682_s3 + $0x28] sm:$0xff]  ;;  %v86_v35 = vmul.f32 2.0, %v70_v27  ;;  %v130_v6 = vlaneseq  ;;  %v2723_v27 = vmov 0 }
   0x9   :  { %1319 = vmatprep.subr.mxu1 %v368_v10  ;;  %1288 = vmatpush3.msra.mxu0 %v170_v9  ;;  %v99_v29 = vld [vmem:[%s2682_s3 + $0x20] sm:$0xff]  ;;  %v1628_v33 = vld [vmem:[%s2682_s3 + $0x68] sm:$0xff]  ;;  %v1642_v36 = vld [vmem:[%s2682_s3 + $0x78] sm:$0xff]  ;;  %v87_v38 = vmul.f32 2.0, %v71_v28  ;;  %v2725_v28 = vmov 0 }
   0xa   :  { %1289 = vmatprep.mubr.msk.f32.mxu0 %vm174_vm0, %v79_v11  ;;  %1320 = vmatpush3.msra.mxu1 %v368_v10  ;;  %v1633_v34 = vld [vmem:[%s2683_s4 + $0x68] sm:$0xff]  ;;  %v1647_v37 = vld [vmem:[%s2683_s4 + $0x78] sm:$0xff]  ;;  %v73_v40 = vld [vmem:[%s2681_s0 + $0x50] sm:$0xff]  ;;  %v1740_v9 = vshrl.u32 %v130_v6, 7  ;;  %v1747_v12 = vand.u32 127, %v130_v6 }
   0xb   :  { %1321 = vmatprep.mubr.msk.f32.mxu1 %vm174_vm0, %v79_v11  ;;  %1290 = vmatmul.mubr.msk.f32.vlgmr.msra.gmra.mxu0 %vm174_vm0, %v80_v13  ;;  %v72_v39 = vld [vmem:[%s2681_s0 + $0x48] sm:$0xff]  ;;  %v101_v41 = vld [vmem:[%s2682_s3 + $0x30] sm:$0xff]  ;;  %v102_v42 = vld [vmem:[%s2682_s3 + $0x38] sm:$0xff]  ;;  %v89_v44 = vmul.f32 2.0, %v73_v40 }
   0xc   :  { %1322 = vmatmul.mubr.msk.f32.vlgmr.msra.gmra.mxu1 %vm174_vm0, %v80_v13  ;;  %1292 = vmatprep.mubr.msk.f32.mxu0 %vm174_vm0, %v81_v14  ;;  %v88_v43 = vmul.f32 2.0, %v72_v39  ;;  %v74_v45 = vld [vmem:[%s2681_s0 + $0x58] sm:$0xff]  ;;  %v75_v46 = vld [vmem:[%s2681_s0 + $0x60] sm:$0xff]  ;;  %v104_v48 = vld [vmem:[%s2682_s3 + $0x48] sm:$0xff]  ;;  %v1743_v10 = vadd.s32 112, %v1740_v9  ;;  %v1753_v15 = vadd.s32 120, %v1740_v9 }
   0xd   :  { %1324 = vmatprep.mubr.msk.f32.mxu1 %vm174_vm0, %v81_v14  ;;  %602 = vperm.xlu0 %1348, %v95_v17   ;;  %v103_v47 = vld [vmem:[%s2682_s3 + $0x40] sm:$0xff]  ;;  %v90_v49 = vmul.f32 2.0, %v74_v45  ;;  %v91_v50 = vmul.f32 2.0, %v75_v46  ;;  %v76_v51 = vld [vmem:[%s2681_s0 + $0x68] sm:$0xff]  ;;  %v77_v52 = vld [vmem:[%s2681_s0 + $0x70] sm:$0xff]  ;;  %v1750_v14 = vadd.s32 104, %v1740_v9 }
   0xe   :  { %608 = vperm.xlu1 %1349, %v97_v19   ;;  %v105_v53 = vld [vmem:[%s2682_s3 + $0x50] sm:$0xff]  ;;  %v106_v54 = vld [vmem:[%s2682_s3 + $0x58] sm:$0xff]  ;;  %v92_v55 = vmul.f32 2.0, %v76_v51  ;;  %v93_v56 = vmul.f32 2.0, %v77_v52  ;;  %v107_v58 = vld [vmem:[%s2682_s3 + $0x60] sm:$0xff]  ;;  %vm2689_vm4 = vcmp.eq.s32.totalorder %v1747_v12, %v1743_v10  ;;  %vm2708_vm7 = vcmp.lt.s32.totalorder %v1747_v12, 8 }
   0xf   :  { %1293 = vmatmul.mubr.msk.f32.gmra.mxu0 %vm174_vm0, %v82_v18  ;;  %v78_v57 = vld [vmem:[%s2681_s0 + $0x78] sm:$0xff]  ;;  %v1758_v16 = vld [vmem:[%s2684_s5] ss:$0 sm:$0xff]  ;;  %vm2690_vm6 = vcmp.eq.s32.totalorder %v1747_v12, %v1750_v14  ;;  %vm2688_vm8 = vcmp.eq.s32.totalorder %v1747_v12, %v1753_v15  ;;  %vm1777_vm10 = vmxor %vm2689_vm4, %vm2706_vm9  ;;  %v2711_v19 = vmov 0  ;;  %v1903_v46 = vadd.s32 16, %v1740_v9 }
  0x10   :  { %1325 = vmatmul.mubr.msk.f32.gmra.mxu1 %vm174_vm0, %v82_v18  ;;  %1295 = vmatprep.mubr.msk.f32.mxu0 %vm174_vm0, %v83_v20  ;;  %v94_v59 = vmul.f32 2.0, %v78_v57  ;;  %v1768_v17 = vld [vmem:[%s2685_s6] ss:$0 sm:$0xff]  ;;  %v2712_v19 = vsel %vm1777_vm10, 4294967295, %v2711_v19  ;;  %vm1792_vm14 = vmxor %vm2690_vm6, %vm2706_vm9 }
  0x11   :  { %1327 = vmatprep.mubr.msk.f32.mxu1 %vm174_vm0, %v83_v20  ;;  %605 = vperm.xlu0 %1348, %v96_v23   ;;  %v2716_v22 = vsel %vm1792_vm14, 4294967295, %v2715_v22  ;;  %v1493_v23 = vmov 0.0  }
  0x12   :  { %611 = vperm.xlu1 %1349, %v98_v24   ;;  %48 = vst.msk [vmem:[#allocation3 + $0x8] sm:$0xff] %vm2687_vm13, %v1493_v23  ;;  %31 = vst.msk [vmem:[#allocation2] sm:$0xff] %vm2687_vm13, %v1493_v23  ;;  %v2717_v24 = vmov 0 }
  0x13   :  { %1296 = vmatmul.mubr.msk.f32.gmra.mxu0 %vm174_vm0, %v84_v25  ;;  %32 = vst.msk [vmem:[#allocation2 + $0x8] sm:$0xff] %vm2687_vm13, %v1493_v23  ;;  %33 = vst.msk [vmem:[#allocation2 + $0x10] sm:$0xff] %vm2687_vm13, %v1493_v23 }
  0x14   :  { %1328 = vmatmul.mubr.msk.f32.gmra.mxu1 %vm174_vm0, %v84_v25  ;;  %1298 = vmatprep.mubr.msk.f32.mxu0 %vm174_vm0, %v85_v26  ;;  %34 = vst.msk [vmem:[#allocation2 + $0x18] sm:$0xff] %vm2687_vm13, %v1493_v23  ;;  %35 = vst.msk [vmem:[#allocation2 + $0x20] sm:$0xff] %vm2687_vm13, %v1493_v23 }
  0x15   :  { %1330 = vmatprep.mubr.msk.f32.mxu1 %vm174_vm0, %v85_v26  ;;  %614 = vperm.xlu0 %1348, %v99_v29   ;;  %36 = vst.msk [vmem:[#allocation2 + $0x28] sm:$0xff] %vm2687_vm13, %v1493_v23  ;;  %37 = vst.msk [vmem:[#allocation2 + $0x30] sm:$0xff] %vm2687_vm13, %v1493_v23  ;;  %v2721_v26 = vmov 0  ;;  %v2727_v29 = vmov 0 }
  0x16   :  { %617 = vperm.xlu1 %1349, %v100_v32   ;;  %38 = vst.msk [vmem:[#allocation2 + $0x38] sm:$0xff] %vm2687_vm13, %v1493_v23  ;;  %39 = vst.msk [vmem:[#allocation2 + $0x40] sm:$0xff] %vm2687_vm13, %v1493_v23  ;;  %v1885_v32 = vadd.s32 8, %v1740_v9 }
  0x17   :  { %1299 = vmatmul.mubr.msk.f32.gmra.mxu0 %vm174_vm0, %v86_v35  ;;  %40 = vst.msk [vmem:[#allocation2 + $0x48] sm:$0xff] %vm2687_vm13, %v1493_v23  ;;  %41 = vst.msk [vmem:[#allocation2 + $0x50] sm:$0xff] %vm2687_vm13, %v1493_v23 }
  0x18   :  { %1331 = vmatmul.mubr.msk.f32.gmra.mxu1 %vm174_vm0, %v86_v35  ;;  %1301 = vmatprep.mubr.msk.f32.mxu0 %vm174_vm0, %v87_v38  ;;  %42 = vst.msk [vmem:[#allocation2 + $0x58] sm:$0xff] %vm2687_vm13, %v1493_v23  ;;  %43 = vst.msk [vmem:[#allocation2 + $0x60] sm:$0xff] %vm2687_vm13, %v1493_v23  ;;  %v1890_v35 = vadd.s32 24, %v1740_v9 }
  0x19   :  { %1333 = vmatprep.mubr.msk.f32.mxu1 %vm174_vm0, %v87_v38  ;;  %620 = vperm.xlu0 %1348, %v101_v41   ;;  %44 = vst.msk [vmem:[#allocation2 + $0x68] sm:$0xff] %vm2687_vm13, %v1493_v23  ;;  %45 = vst.msk [vmem:[#allocation2 + $0x70] sm:$0xff] %vm2687_vm13, %v1493_v23 }
  0x1a   :  { %623 = vperm.xlu1 %1349, %v102_v42   ;;  %46 = vst.msk [vmem:[#allocation2 + $0x78] sm:$0xff] %vm2687_vm13, %v1493_v23  ;;  %47 = vst.msk [vmem:[#allocation3] sm:$0xff] %vm2687_vm13, %v1493_v23 }
  0x1b   :  { %1302 = vmatmul.mubr.msk.f32.gmra.mxu0 %vm174_vm0, %v88_v43  ;;  %49 = vst.msk [vmem:[#allocation3 + $0x10] sm:$0xff] %vm2687_vm13, %v1493_v23  ;;  %50 = vst.msk [vmem:[#allocation3 + $0x18] sm:$0xff] %vm2687_vm13, %v1493_v23 }
  0x1c   :  { %1334 = vmatmul.mubr.msk.f32.gmra.mxu1 %vm174_vm0, %v88_v43  ;;  %1304 = vmatprep.mubr.msk.f32.mxu0 %vm174_vm0, %v89_v44  ;;  %51 = vst.msk [vmem:[#allocation3 + $0x20] sm:$0xff] %vm2687_vm13, %v1493_v23  ;;  %52 = vst.msk [vmem:[#allocation3 + $0x28] sm:$0xff] %vm2687_vm13, %v1493_v23 }
  0x1d   :  { %1336 = vmatprep.mubr.msk.f32.mxu1 %vm174_vm0, %v89_v44  ;;  %626 = vperm.xlu0 %1348, %v103_v47   ;;  %53 = vst.msk [vmem:[#allocation3 + $0x30] sm:$0xff] %vm2687_vm13, %v1493_v23  ;;  %54 = vst.msk [vmem:[#allocation3 + $0x38] sm:$0xff] %vm2687_vm13, %v1493_v23  ;;  %v1906_v47 = vadd.s32 32, %v1740_v9 }
  0x1e   :  { %629 = vperm.xlu1 %1349, %v104_v48   ;;  %55 = vst.msk [vmem:[#allocation3 + $0x40] sm:$0xff] %vm2687_vm13, %v1493_v23  ;;  %56 = vst.msk [vmem:[#allocation3 + $0x48] sm:$0xff] %vm2687_vm13, %v1493_v23 }
  0x1f   :  { %1305 = vmatmul.mubr.msk.f32.gmra.mxu0 %vm174_vm0, %v90_v49  ;;  %57 = vst.msk [vmem:[#allocation3 + $0x50] sm:$0xff] %vm2687_vm13, %v1493_v23  ;;  %58 = vst.msk [vmem:[#allocation3 + $0x58] sm:$0xff] %vm2687_vm13, %v1493_v23  ;;  %vm2693_vm6 = vcmp.eq.s32.totalorder %v1747_v12, %v1906_v47 }
  0x20   :  { %1337 = vmatmul.mubr.msk.f32.gmra.mxu1 %vm174_vm0, %v90_v49  ;;  %1307 = vmatprep.mubr.msk.f32.mxu0 %vm174_vm0, %v91_v50  ;;  %59 = vst.msk [vmem:[#allocation3 + $0x60] sm:$0xff] %vm2687_vm13, %v1493_v23  ;;  %60 = vst.msk [vmem:[#allocation3 + $0x68] sm:$0xff] %vm2687_vm13, %v1493_v23 }
  0x21   :  { %1339 = vmatprep.mubr.msk.f32.mxu1 %vm174_vm0, %v91_v50  ;;  %632 = vperm.xlu0 %1348, %v105_v53   ;;  %61 = vst.msk [vmem:[#allocation3 + $0x70] sm:$0xff] %vm2687_vm13, %v1493_v23  ;;  %62 = vst.msk [vmem:[#allocation3 + $0x78] sm:$0xff] %vm2687_vm13, %v1493_v23 }
  0x22   :  { %635 = vperm.xlu1 %1349, %v106_v54   ;;  %v1918_v54 = vadd.s32 40, %v1740_v9 }
  0x23   :  { %1308 = vmatmul.mubr.msk.f32.gmra.mxu0 %vm174_vm0, %v92_v55 }
  0x24   :  { %1340 = vmatmul.mubr.msk.f32.gmra.mxu1 %vm174_vm0, %v92_v55  ;;  %1310 = vmatprep.mubr.msk.f32.mxu0 %vm174_vm0, %v93_v56  ;;  %v1921_v55 = vadd.s32 48, %v1740_v9 }
  0x25   :  { %1342 = vmatprep.mubr.msk.f32.mxu1 %vm174_vm0, %v93_v56  ;;  %638 = vperm.xlu0 %1348, %v107_v58  }
  0x26   :  { %641 = vperm.xlu1 %1349, %v1628_v33  }
  0x27   :  { %1311 = vmatmul.mubr.msk.f32.gmra.mxu0 %vm174_vm0, %v94_v59 }
  0x28   :  { %1343 = vmatmul.mubr.msk.f32.gmra.mxu1 %vm174_vm0, %v94_v59  ;;  %vm1833_vm0 = vmxor %vm2688_vm8, %vm2706_vm9 }
  0x29   :  { %644 = vperm.xlu0 %1348, %v1613_v30   ;;  %v2718_v24 = vsel %vm1833_vm0, 4294967295, %v2717_v24  ;;  %vm2731_vm0 = vcmp.eq.s32.totalorder %v1747_v12, %v1740_v9 }
  0x2a   :  { %647 = vperm.xlu1 %1349, %v1642_v36  }
  0x88   :  { %v1716_v60 = vpop.permute.xlu0 %602 }
  0x89   :  { %v1718_v61 = vpop.permute.xlu1 %608 }
  0x8c   :  { %v1720_v62 = vpop.permute.xlu0 %605 }
  0x8d   :  { %v1722_v63 = vpop.permute.xlu1 %611 }
  0x90   :  { %v1724_v0 = vpop.permute.xlu0 %614 }
  0x91   :  { %v1726_v1 = vpop.permute.xlu1 %617 }
  0x94   :  { %v1728_v2 = vpop.permute.xlu0 %620 }
  0x95   :  { %v1730_v3 = vpop.permute.xlu1 %623 }
  0x98   :  { %v1732_v4 = vpop.permute.xlu0 %626 }
  0x99   :  { %v1734_v5 = vpop.permute.xlu1 %629 }
  0x9c   :  { %v1736_v7 = vpop.permute.xlu0 %632 }
  0x9d   :  { %v1738_v8 = vpop.permute.xlu1 %635 }
  0xa0   :  { %v1745_v11 = vpop.permute.xlu0 %638 }
  0xa1   :  { %v642_v13 = vpop.permute.xlu1 %641 }
  0xa2   :  { %vm662_vm5 = vcmp.ne.s32.totalorder %v1758_v16, %v642_v13  ;;  %vm700_vm11 = vcmp.ne.s32.totalorder %v1768_v17, %v642_v13 }
  0xa3   :  { %vm1784_vm12 = vmand %vm2708_vm7, %vm662_vm5 }
  0xa4   :  { %v645_v18 = vpop.permute.xlu0 %644  ;;  %vm1842_vm3 = vmand %vm2708_vm7, %vm700_vm11 }
  0xa5   :  { %v648_v20 = vpop.permute.xlu1 %647  ;;  %vm663_vm15 = vcmp.ne.s32.totalorder %v1758_v16, %v645_v18  ;;  %vm701_vm1 = vcmp.ne.s32.totalorder %v1768_v17, %v645_v18  ;;  %v1939_v18 = vadd.s32 56, %v1740_v9 }
  0xa6   :  { %vm664_vm5 = vcmp.ne.s32.totalorder %v1758_v16, %v648_v20  ;;  %vm1853_vm13 = vmand %vm2708_vm7, %vm663_vm15  ;;  %vm702_vm8 = vcmp.ne.s32.totalorder %v1768_v17, %v648_v20  ;;  %vm2694_vm15 = vcmp.eq.s32.totalorder %v1747_v12, %v1903_v46  ;;  %v1942_v20 = vadd.s32 64, %v1740_v9 }
  0xa7   :  { %v2722_v26 = vsel %vm1853_vm13, 4294967295, %v2721_v26  ;;  %vm1860_vm11 = vmand %vm2708_vm7, %vm664_vm5  ;;  %vm2691_vm5 = vcmp.eq.s32.totalorder %v1747_v12, %v1890_v35 }
  0xa8   :  { %v2724_v27 = vsel %vm1860_vm11, 4294967295, %v2723_v27  ;;  %vm1866_vm4 = vmand %vm2708_vm7, %vm701_vm1  ;;  %vm2692_vm1 = vcmp.eq.s32.totalorder %v1747_v12, %v1885_v32 }
  0xa9   :  { %v2726_v28 = vsel %vm1866_vm4, 4294967295, %v2725_v28  ;;  %vm1876_vm2 = vmand %vm2708_vm7, %vm702_vm8  ;;  %vm2695_vm8 = vcmp.eq.s32.totalorder %v1747_v12, %v1740_v9 }
  0xaa   :  { %v2728_v29 = vsel %vm1876_vm2, 4294967295, %v2727_v29  ;;  %vm1990_vm2 = vmxor %vm2731_vm0, %vm2706_vm9  ;;  %vm688_vm0 = vcmp.ne.s32.totalorder %v1768_v17, %v1720_v62 }
  0xcb   :  { %v1291_v38 = vpop.f32.mrf.mxu0 }
  0xcc   :  { %v1323_v39 = vpop.f32.mrf.mxu1  ;;  %v519_v49 = vmul.f32 1.442695, %v1291_v38 }
  0xcd   :  { %v929_v40 = vsel %vm2692_vm1, %v1323_v39, 0.0  ;;  %v289_v41 = vpop.f32.mrf.mxu0  ;;  %v551_v57 = vmul.f32 1.442695, %v1323_v39  ;;  %vm2697_vm1 = vcmp.eq.s32.totalorder %v1747_v12, %v1921_v55 }
  0xce   :  { %946 = vadd.xlane.f32.xlu1 %v929_v40  ;;  %v438_v42 = vpop.f32.mrf.mxu1  ;;  %v517_v43 = vmul.f32 1.442695, %v289_v41 }
  0xcf   :  { %v928_v44 = vsel %vm2695_vm8, %v438_v42, 0.0  ;;  %v549_v51 = vmul.f32 1.442695, %v438_v42  ;;  %v1294_v52 = vpop.f32.mrf.mxu0  ;;  %vm2701_vm8 = vcmp.eq.s32.totalorder %v1747_v12, %v1942_v20  ;;  %v1963_v42 = vadd.s32 72, %v1740_v9 }
  0xd0   :  { %944 = vadd.xlane.f32.xlu0 %v928_v44  ;;  %v1326_v45 = vpop.f32.mrf.mxu1  ;;  %1350 = vpow2.f32 %v517_v43  ;;  %v523_v44 = vmul.f32 1.442695, %v1294_v52 }
  0xd1   :  { %v931_v48 = vsel %vm2691_vm5, %v1326_v45, 0.0  ;;  %1352 = vpow2.f32 %v519_v49  ;;  %v299_v6 = vpop.f32.mrf.mxu0  ;;  %vm2696_vm5 = vcmp.eq.s32.totalorder %v1747_v12, %v1918_v54 }
  0xd2   :  { %v448_v50 = vpop.f32.mrf.mxu1  ;;  %1354 = vpow2.f32 %v549_v51  ;;  %v521_v23 = vmul.f32 1.442695, %v299_v6 }
  0xd3   :  { %v930_v58 = vsel %vm2694_vm15, %v448_v50, 0.0  ;;  %1356 = vpow2.f32 %v551_v57  ;;  %vm2700_vm15 = vcmp.eq.s32.totalorder %v1747_v12, %v1939_v18  ;;  %v553_v51 = vmul.f32 1.442695, %v448_v50 }
  0xd4   :  { %950 = vadd.xlane.f32.xlu0 %v931_v48  ;;  %v1911_v53 = vpop.f32.mrf.mxu1  ;;  %1358 = vpow2.f32 %v521_v23 }
  0xd5   :  { %v933_v39 = vsel %vm2696_vm5, %v1911_v53, 0.0  ;;  %vm687_vm5 = vcmp.ne.s32.totalorder %v1768_v17, %v1716_v60  ;;  %1360 = vpow2.f32 %v523_v44 }
  0xd6   :  { %v1923_v56 = vpop.f32.mrf.mxu1  ;;  %1362 = vpow2.f32 %v553_v51 }
  0xd7   :  { %v932_v59 = vsel %vm2693_vm6, %v1923_v56, 0.0  ;;  %vm649_vm6 = vcmp.ne.s32.totalorder %v1758_v16, %v1716_v60 }
  0xd8   :  { %948 = vadd.xlane.f32.xlu0 %v930_v58  ;;  %952 = vadd.xlane.f32.xlu1 %v932_v59  ;;  %v1932_v13 = vpop.f32.mrf.mxu1  ;;  %v1297_v58 = vpop.f32.mrf.mxu0 }
  0xd9   :  { %v935_v57 = vsel %vm2700_vm15, %v1932_v13, 0.0  ;;  %vm1998_vm15 = vmand %vm2708_vm7, %vm687_vm5  ;;  %vm2739_vm5 = vcmp.eq.s32.totalorder %v1747_v12, %v1963_v42 }
  0xda   :  { %v1944_v38 = vpop.f32.mrf.mxu1  ;;  %v309_v44 = vpop.f32.mrf.mxu0 }
  0xdb   :  { %v934_v40 = vsel %vm2697_vm1, %v1944_v38, 0.0  ;;  %vm1974_vm1 = vmand %vm2708_vm7, %vm649_vm6  ;;  %vm2736_vm6 = vcmp.eq.s32.totalorder %v1747_v12, %v1885_v32  ;;  %v525_v51 = vmul.f32 1.442695, %v309_v44 }
  0xdc   :  { %954 = vadd.xlane.f32.xlu0 %v933_v39  ;;  %956 = vadd.xlane.f32.xlu1 %v934_v40  ;;  %v1956_v41 = vpop.f32.mrf.mxu1  ;;  %vm2012_vm10 = vmxor %vm2736_vm6, %vm2706_vm9  ;;  %v555_v39 = vmul.f32 1.442695, %v1326_v45  ;;  %v2032_v45 = vadd.s32 80, %v1740_v9  ;;  %v1300_v44 = vpop.f32.mrf.mxu0 }
  0xdd   :  { %v1351_v43 = vpop.eup %1350  ;;  %v937_v40 = vsel %vm2739_vm5, %v1956_v41, 0.0  ;;  %vm689_vm5 = vcmp.ne.s32.totalorder %v1768_v17, %v1718_v61 }
  0xde   :  { %v1967_v48 = vpop.f32.mrf.mxu1  ;;  %v767_v59 = vsel %vm1974_vm1, %v1351_v43, 0.0  ;;  %v1353_v23 = vpop.eup %1352  ;;  %vm735_vm1 = vmand %vm1998_vm15, %vm1990_vm2  ;;  %vm651_vm15 = vcmp.ne.s32.totalorder %v1758_v16, %v1718_v61  ;;  %1364 = vpow2.f32 %v555_v39  ;;  %v527_v39 = vmul.f32 1.442695, %v1297_v58 }
  0xdf   :  { %v936_v52 = vsel %vm2701_vm8, %v1967_v48, 0.0  ;;  %vm650_vm8 = vcmp.ne.s32.totalorder %v1758_v16, %v1720_v62  ;;  %v1355_v43 = vpop.eup %1354  ;;  %vm2039_vm2 = vmand %vm2708_vm7, %vm688_vm0  ;;  %vm2703_vm0 = vcmp.eq.s32.totalorder %v1747_v12, %v2032_v45  ;;  %v2054_v62 = vadd.s32 88, %v1740_v9 }
  0xe0   :  { %958 = vadd.xlane.f32.xlu0 %v935_v57  ;;  %960 = vadd.xlane.f32.xlu1 %v936_v52  ;;  %v2024_v32 = vpop.f32.mrf.mxu1  ;;  %vm668_vm6 = vmand %vm2708_vm7, %vm650_vm8  ;;  %v815_v52 = vsel %vm735_vm1, %v1355_v43, 0.0  ;;  %v1357_v60 = vpop.eup %1356  ;;  %1366 = vpow2.f32 %v525_v51  ;;  %v559_v51 = vmul.f32 1.442695, %v1911_v53  ;;  %v2123_v53 = vadd.s32 96, %v1740_v9 }
  0xe1   :  { %v768_v57 = vsel %vm668_vm6, %v1353_v23, 0.0  ;;  %vm736_vm8 = vmand %vm2039_vm2, %vm2012_vm10  ;;  %v1359_v23 = vpop.eup %1358  ;;  %vm2705_vm6 = vcmp.eq.s32.totalorder %v1747_v12, %v2054_v62  ;;  %vm2744_vm2 = vcmp.eq.s32.totalorder %v1747_v12, %v1903_v46  ;;  %1368 = vpow2.f32 %v527_v39 }
  0xe2   :  { %v2045_v50 = vpop.f32.mrf.mxu1  ;;  %vm2067_vm10 = vmand %vm2708_vm7, %vm651_vm15  ;;  %v816_v43 = vsel %vm736_vm8, %v1357_v60, 0.0  ;;  %v1361_v49 = vpop.eup %1360  ;;  %v531_v9 = vmul.f32 1.442695, %v1300_v44  ;;  %v561_v58 = vmul.f32 1.442695, %v1944_v38 }
  0xe3   :  { %vm2080_vm15 = vmxor %vm2744_vm2, %vm2706_vm9  ;;  %vm2749_vm2 = vcmp.eq.s32.totalorder %v1747_v12, %v1890_v35  ;;  %v319_v60 = vpop.f32.mrf.mxu0  ;;  %v569_v44 = vmul.f32 1.442695, %v2045_v50 }
  0xe4   :  { %962 = vadd.xlane.f32.xlu0 %v937_v40  ;;  %783 = vadd.xlane.f32.xlu1 %v767_v59  ;;  %v938_v59 = vsel %vm2703_vm0, %v2045_v50, 0.0  ;;  %v557_v40 = vmul.f32 1.442695, %v1923_v56  ;;  %v769_v56 = vsel %vm2067_vm10, %v1359_v23, 0.0  ;;  %vm2088_vm8 = vmand %vm2708_vm7, %vm689_vm5  ;;  %vm690_vm0 = vcmp.ne.s32.totalorder %v1768_v17, %v1722_v63 }
  0xe5   :  { %vm2098_vm1 = vmxor %vm2749_vm2, %vm2706_vm9  ;;  %vm2752_vm5 = vcmp.ne.s32.totalorder %v1758_v16, %v1722_v63  ;;  %v529_v39 = vmul.f32 1.442695, %v319_v60  ;;  %v1303_v61 = vpop.f32.mrf.mxu0 }
  0xe6   :  { %1370 = vpow2.f32 %v557_v40  ;;  %vm2112_vm10 = vmand %vm2708_vm7, %vm2752_vm5 }
  0xe7   :  { %vm737_vm2 = vmand %vm2088_vm8, %vm2080_vm15  ;;  %1372 = vpow2.f32 %v559_v51  ;;  %v770_v6 = vsel %vm2112_vm10, %v1361_v49, 0.0  ;;  %vm2704_vm15 = vcmp.eq.s32.totalorder %v1747_v12, %v2123_v53  ;;  %vm653_vm8 = vcmp.ne.s32.totalorder %v1758_v16, %v1724_v0  ;;  %v329_v51 = vpop.f32.mrf.mxu0 }
  0xe8   :  { %785 = vadd.xlane.f32.xlu0 %v768_v57  ;;  %831 = vadd.xlane.f32.xlu1 %v815_v52  ;;  %v939_v57 = vsel %vm2705_vm6, %v2024_v32, 0.0  ;;  %v1363_v52 = vpop.eup %1362  ;;  %vm2130_vm5 = vmand %vm2708_vm7, %vm690_vm0  ;;  %1374 = vpow2.f32 %v529_v39  ;;  %vm2757_vm10 = vcmp.eq.s32.totalorder %v1747_v12, %v1906_v47  ;;  %vm692_vm6 = vcmp.ne.s32.totalorder %v1768_v17, %v1726_v1 }
  0xe9   :  { %v817_v40 = vsel %vm737_vm2, %v1363_v52, 0.0  ;;  %vm738_vm0 = vmand %vm2130_vm5, %vm2098_vm1  ;;  %vm691_vm1 = vcmp.ne.s32.totalorder %v1768_v17, %v1724_v0  ;;  %vm654_vm5 = vcmp.ne.s32.totalorder %v1758_v16, %v1726_v1  ;;  %1376 = vpow2.f32 %v531_v9  ;;  %v1306_v60 = vpop.f32.mrf.mxu0 }
  0xea   :  { %vm2157_vm2 = vmxor %vm2757_vm10, %vm2706_vm9  ;;  %v563_v47 = vmul.f32 1.442695, %v1932_v13  ;;  %1378 = vpow2.f32 %v561_v58  ;;  %v533_v35 = vmul.f32 1.442695, %v329_v51  ;;  %v565_v39 = vmul.f32 1.442695, %v1967_v48 }
  0xeb   :  { %vm671_vm10 = vmand %vm2708_vm7, %vm653_vm8  ;;  %v567_v48 = vmul.f32 1.442695, %v1956_v41 }
  0xec   :  { %833 = vadd.xlane.f32.xlu0 %v816_v43  ;;  %964 = vadd.xlane.f32.xlu1 %v938_v59  ;;  %v2116_v59 = vpop.f32.mrf.mxu1  ;;  %v1365_v43 = vpop.eup %1364  ;;  %vm672_vm8 = vmand %vm2708_vm7, %vm654_vm5  ;;  %1380 = vpow2.f32 %v563_v47  ;;  %vm693_vm5 = vcmp.ne.s32.totalorder %v1768_v17, %v1728_v2 }
  0xed   :  { %v818_v49 = vsel %vm738_vm0, %v1365_v43, 0.0  ;;  %v1367_v46 = vpop.eup %1366  ;;  %vm2760_vm0 = vcmp.eq.s32.totalorder %v1747_v12, %v1918_v54  ;;  %1382 = vpow2.f32 %v533_v35 }
  0xee   :  { %v771_v52 = vsel %vm671_vm10, %v1367_v46, 0.0  ;;  %vm2200_vm10 = vmand %vm2708_vm7, %vm692_vm6 }
  0xf0   :  { %966 = vadd.xlane.f32.xlu0 %v939_v57  ;;  %787 = vadd.xlane.f32.xlu1 %v769_v56  ;;  %v2136_v56 = vpop.f32.mrf.mxu1  ;;  %v1369_v57 = vpop.eup %1368 }
  0xf1   :  { %v940_v63 = vsel %vm2704_vm15, %v2136_v56, 0.0  ;;  %vm2167_vm15 = vmxor %vm2760_vm0, %vm2706_vm9  ;;  %vm2763_vm0 = vcmp.eq.s32.totalorder %v1747_v12, %v1750_v14  ;;  %v535_v14 = vmul.f32 1.442695, %v1303_v61 }
  0xf2   :  { %v941_v54 = vsel %vm2763_vm0, %v2116_v59, 0.0  ;;  %vm707_vm9 = vmand %vm2708_vm7, %vm691_vm1  ;;  %v2188_v23 = vpop.f32.mrf.mxu1  ;;  %vm2768_vm0 = vcmp.eq.s32.totalorder %v1747_v12, %v1921_v55  ;;  %v539_v55 = vmul.f32 1.442695, %v1306_v60 }
  0xf3   :  { %v1371_v13 = vpop.eup %1370  ;;  %vm739_vm1 = vmand %vm707_vm9, %vm2157_vm2  ;;  %vm2766_vm9 = vcmp.eq.s32.totalorder %v1747_v12, %v1743_v10  ;;  %1384 = vpow2.f32 %v535_v14  ;;  %vm655_vm2 = vcmp.ne.s32.totalorder %v1758_v16, %v1728_v2 }
  0xf4   :  { %789 = vadd.xlane.f32.xlu0 %v770_v6  ;;  %835 = vadd.xlane.f32.xlu1 %v817_v40  ;;  %v772_v6 = vsel %vm672_vm8, %v1369_v57, 0.0  ;;  %v819_v40 = vsel %vm739_vm1, %v1371_v13, 0.0  ;;  %v1373_v43 = vpop.eup %1372  ;;  %v2207_v9 = vpop.f32.mrf.mxu1  ;;  %vm740_vm6 = vmand %vm2200_vm10, %vm2167_vm15  ;;  %1386 = vpow2.f32 %v565_v39  ;;  %vm2767_vm15 = vmmov 1  }
  0xf5   :  { %v942_v1 = vsel %vm2766_vm9, %v2207_v9, 0.0  ;;  %v820_v58 = vsel %vm740_vm6, %v1373_v43, 0.0  ;;  %vm2226_vm8 = vmxor %vm2768_vm0, %vm2767_vm15  ;;  %vm656_vm10 = vcmp.ne.s32.totalorder %v1758_v16, %v1730_v3  ;;  %vm2771_vm1 = vcmp.eq.s32.totalorder %v1747_v12, %v1939_v18 }
  0xf6   :  { %vm2236_vm6 = vmxor %vm2771_vm1, %vm2767_vm15  ;;  %1388 = vpow2.f32 %v567_v48  ;;  %vm2774_vm1 = vcmp.eq.s32.totalorder %v1747_v12, %v1753_v15  ;;  %v571_v15 = vmul.f32 1.442695, %v2024_v32  ;;  %v573_v39 = vmul.f32 1.442695, %v2136_v56 }
  0xf7   :  { %vm673_vm0 = vmand %vm2708_vm7, %vm655_vm2  ;;  %v943_v18 = vsel %vm2774_vm1, %v2188_v23, 0.0  ;;  %v575_v56 = vmul.f32 1.442695, %v2116_v59  ;;  %v577_v10 = vmul.f32 1.442695, %v2207_v9  ;;  %v751_v9 = vld [vmem:[#allocation2] sm:$0xff] }
  0xf8   :  { %837 = vadd.xlane.f32.xlu0 %v818_v49  ;;  %968 = vadd.xlane.f32.xlu1 %v940_v63  ;;  %v339_v63 = vpop.f32.mrf.mxu0  ;;  %v1375_v49 = vpop.eup %1374  ;;  %vm2257_vm9 = vmand %vm2708_vm7, %vm693_vm5  ;;  %vm2786_vm5 = vcmp.ne.s32.totalorder %v1758_v16, %v1732_v4 }
  0xf9   :  { %v537_v61 = vmul.f32 1.442695, %v339_v63  ;;  %v1377_v51 = vpop.eup %1376  ;;  %v773_v38 = vsel %vm673_vm0, %v1375_v49, 0.0  ;;  %vm674_vm2 = vmand %vm2708_vm7, %vm656_vm10  ;;  %vm2777_vm0 = vcmp.ne.s32.totalorder %v1768_v17, %v1730_v3 }
  0xfa   :  { %v1309_v46 = vpop.f32.mrf.mxu0  ;;  %v1379_v57 = vpop.eup %1378  ;;  %vm2271_vm1 = vmand %vm2708_vm7, %vm2777_vm0  ;;  %vm2780_vm0 = vcmp.eq.s32.totalorder %v1747_v12, %v1942_v20 }
  0xfb   :  { %1390 = vpow2.f32 %v537_v61  ;;  %vm741_vm10 = vmand %vm2257_vm9, %vm2226_vm8  ;;  %v1381_v50 = vpop.eup %1380  ;;  %v543_v0 = vmul.f32 1.442695, %v1309_v46 }
  0xfc   :  { %970 = vadd.xlane.f32.xlu0 %v941_v54  ;;  %791 = vadd.xlane.f32.xlu1 %v771_v52  ;;  %v349_v35 = vpop.f32.mrf.mxu0  ;;  %1392 = vpow2.f32 %v539_v55  ;;  %v774_v54 = vsel %vm674_vm2, %v1377_v51, 0.0  ;;  %v821_v52 = vsel %vm741_vm10, %v1379_v57, 0.0  ;;  %vm2286_vm7 = vmxor %vm2780_vm0, %vm2767_vm15  ;;  %v1383_v60 = vpop.eup %1382  ;;  %vm2783_vm2 = vcmp.eq.s32.totalorder %v1747_v12, %v1963_v42 }
  0xfd   :  { %1394 = vpow2.f32 %v569_v44  ;;  %v541_v3 = vmul.f32 1.442695, %v349_v35  ;;  %vm742_vm8 = vmand %vm2271_vm1, %vm2236_vm6  ;;  %vm2787_vm6 = vcmp.lt.s32.totalorder %v1747_v12, 8  ;;  %v579_v51 = vmul.f32 1.442695, %v2188_v23 }
  0xfe   :  { %v1312_v32 = vpop.f32.mrf.mxu0  ;;  %vm2302_vm10 = vmxor %vm2783_vm2, %vm2767_vm15  ;;  %1396 = vpow2.f32 %v571_v15  ;;  %v822_v42 = vsel %vm742_vm8, %v1381_v50, 0.0  ;;  %vm2788_vm2 = vcmp.ne.s32.totalorder %v1768_v17, %v1732_v4  ;;  %v919_v4 = vld [vmem:[#allocation3 + $0x38] sm:$0xff] }
  0xff   :  { %vm675_vm1 = vmand %vm2787_vm6, %vm2786_vm5  ;;  %1398 = vpow2.f32 %v541_v3  ;;  %vm2792_vm5 = vcmp.ne.s32.totalorder %v1758_v16, %v1734_v5  ;;  %v547_v49 = vmul.f32 1.442695, %v1312_v32  ;;  %v914_v32 = vld [vmem:[#allocation3 + $0x10] sm:$0xff] }
 0x100   :  { %793 = vadd.xlane.f32.xlu0 %v772_v6  ;;  %839 = vadd.xlane.f32.xlu1 %v819_v40  ;;  %v1385_v14 = vpop.eup %1384  ;;  %v775_v6 = vsel %vm675_vm1, %v1383_v60, 0.0  ;;  %vm2789_vm9 = vmmov %vm2787_vm6  ;;  %v359_v63 = vpop.f32.mrf.mxu0  ;;  %vm2793_vm1 = vcmp.ne.s32.totalorder %v1768_v17, %v1734_v5  ;;  %1400 = vpow2.f32 %v543_v0 }
 0x101   :  { %vm2319_vm0 = vmand %vm2789_vm9, %vm2788_vm2  ;;  %v1387_v43 = vpop.eup %1386  ;;  %vm659_vm9 = vcmp.ne.s32.totalorder %v1758_v16, %v1736_v7  ;;  %1402 = vpow2.f32 %v573_v39  ;;  %v545_v5 = vmul.f32 1.442695, %v359_v63  ;;  %v917_v39 = vld [vmem:[#allocation3 + $0x28] sm:$0xff] }
 0x102   :  { %vm676_vm8 = vmand %vm2787_vm6, %vm2792_vm5  ;;  %1404 = vpow2.f32 %v575_v56  ;;  %v920_v56 = vld [vmem:[#allocation3 + $0x40] sm:$0xff] }
 0x103   :  { %vm2794_vm4 = vmmov %vm2787_vm6  ;;  %v776_v48 = vsel %vm676_vm8, %v1385_v14, 0.0  ;;  %vm697_vm6 = vcmp.ne.s32.totalorder %v1768_v17, %v1736_v7  ;;  %vm2800_vm8 = vcmp.eq.s32.totalorder %v1747_v12, %v2054_v62  ;;  %1406 = vpow2.f32 %v545_v5 }
 0x104   :  { %841 = vadd.xlane.f32.xlu0 %v820_v58  ;;  %972 = vadd.xlane.f32.xlu1 %v942_v1  ;;  %vm2333_vm11 = vmand %vm2794_vm4, %vm2793_vm1  ;;  %v1389_v1 = vpop.eup %1388  ;;  %vm2797_vm4 = vcmp.eq.s32.totalorder %v1747_v12, %v2032_v45  ;;  %1408 = vpow2.f32 %v547_v49 }
 0x105   :  { %vm743_vm2 = vmand %vm2319_vm0, %vm2286_vm7  ;;  %vm660_vm0 = vcmp.ne.s32.totalorder %v1758_v16, %v1738_v8  ;;  %1410 = vpow2.f32 %v577_v10 }
 0x106   :  { %v823_v61 = vsel %vm743_vm2, %v1387_v43, 0.0  ;;  %vm2348_vm5 = vmxor %vm2797_vm4, %vm2767_vm15  ;;  %vm698_vm2 = vcmp.ne.s32.totalorder %v1768_v17, %v1738_v8  ;;  %1412 = vpow2.f32 %v579_v51 }
 0x107   :  { %vm744_vm7 = vmand %vm2333_vm11, %vm2302_vm10  ;;  %vm2803_vm11 = vcmp.lt.s32.totalorder %v1747_v12, 8 }
 0x108   :  { %974 = vadd.xlane.f32.xlu0 %v943_v18  ;;  %795 = vadd.xlane.f32.xlu1 %v773_v38  ;;  %v1391_v59 = vpop.eup %1390  ;;  %vm2364_vm1 = vmxor %vm2800_vm8, %vm2767_vm15  ;;  %v824_v62 = vsel %vm744_vm7, %v1389_v1, 0.0  ;;  %vm661_vm7 = vcmp.ne.s32.totalorder %v1758_v16, %v1745_v11 }
 0x109   :  { %vm677_vm10 = vmand %vm2803_vm11, %vm659_vm9  ;;  %v1393_v46 = vpop.eup %1392 }
 0x10a   :  { %v777_v41 = vsel %vm677_vm10, %v1391_v59, 0.0  ;;  %vm2804_vm4 = vmmov %vm2803_vm11  ;;  %v1395_v55 = vpop.eup %1394  ;;  %v921_v59 = vld [vmem:[#allocation3 + $0x48] sm:$0xff] }
 0x10b   :  { %vm713_vm8 = vmand %vm2804_vm4, %vm697_vm6  ;;  %v1397_v7 = vpop.eup %1396 }
 0x10c   :  { %797 = vadd.xlane.f32.xlu0 %v774_v54  ;;  %843 = vadd.xlane.f32.xlu1 %v821_v52  ;;  %vm2805_vm9 = vmmov %vm2804_vm4  ;;  %v1399_v18 = vpop.eup %1398 }
 0x10d   :  { %vm678_vm11 = vmand %vm2805_vm9, %vm660_vm0  ;;  %v1401_v16 = vpop.eup %1400 }
 0x10e   :  { %vm2806_vm13 = vmmov %vm2804_vm4  ;;  %v778_v8 = vsel %vm678_vm11, %v1393_v46, 0.0  ;;  %v780_v47 = vsel %vm1784_vm12, %v1401_v16, 0.0  ;;  %vm2816_vm12 = vnez %v2726_v28  ;;  %v915_v28 = vld [vmem:[#allocation3 + $0x18] sm:$0xff]  ;;  %v752_v16 = vld [vmem:[#allocation2 + $0x8] sm:$0xff] }
 0x10f   :  { %vm2388_vm14 = vmand %vm2806_vm13, %vm698_vm2  ;;  %vm699_vm13 = vcmp.ne.s32.totalorder %v1768_v17, %v1745_v11  ;;  %v1403_v11 = vpop.eup %1402 }
 0x110   :  { %845 = vadd.xlane.f32.xlu0 %v822_v42  ;;  %799 = vadd.xlane.f32.xlu1 %v775_v6  ;;  %vm745_vm6 = vmand %vm713_vm8, %vm2348_vm5  ;;  %vm2809_vm5 = vcmp.eq.s32.totalorder %v1747_v12, %v2123_v53  ;;  %v1405_v17 = vpop.eup %1404  ;;  %v918_v42 = vld [vmem:[#allocation3 + $0x30] sm:$0xff] }
 0x111   :  { %v825_v44 = vsel %vm745_vm6, %v1395_v55, 0.0  ;;  %vm746_vm0 = vmand %vm2388_vm14, %vm2364_vm1  ;;  %v1407_v57 = vpop.eup %1406  ;;  %vm2812_vm14 = vnez %v2716_v22  ;;  %vm2814_vm1 = vnez %v2722_v26  ;;  %vm2817_vm6 = vnez %v2712_v19  ;;  %v913_v26 = vld [vmem:[#allocation3 + $0x8] sm:$0xff] }
 0x112   :  { %vm731_vm2 = vmxor %vm2809_vm5, %vm2767_vm15  ;;  %v826_v23 = vsel %vm746_vm0, %v1397_v7, 0.0  ;;  %v1409_v35 = vpop.eup %1408  ;;  %v781_v2 = vsel %vm2814_vm1, %v1407_v57, 0.0  ;;  %vm2820_vm0 = vnez %v2718_v24 }
 0x113   :  { %vm2810_vm10 = vmmov %vm2804_vm4  ;;  %v1411_v15 = vpop.eup %1410 }
 0x114   :  { %801 = vadd.xlane.f32.xlu0 %v776_v48  ;;  %847 = vadd.xlane.f32.xlu1 %v823_v61  ;;  %vm679_vm4 = vmand %vm2810_vm10, %vm661_vm7  ;;  %vm2815_vm7 = vnez %v2724_v27  ;;  %v1413_v25 = vpop.eup %1412  ;;  %v912_v27 = vld [vmem:[#allocation3] sm:$0xff] }
 0x115   :  { %v779_v38 = vsel %vm679_vm4, %v1399_v18, 0.0  ;;  %vm2811_vm8 = vmmov %vm2805_vm9  ;;  %v782_v21 = vsel %vm2815_vm7, %v1409_v35, 0.0 }
 0x116   :  { %vm715_vm9 = vmand %vm2811_vm8, %vm699_vm13 }
 0x117   :  { %vm747_vm11 = vmand %vm715_vm9, %vm731_vm2  ;;  %vm2822_vm2 = vcmask 7168  }
 0x118   :  { %849 = vadd.xlane.f32.xlu0 %v824_v62  ;;  %803 = vadd.xlane.f32.xlu1 %v777_v41  ;;  %v827_v53 = vsel %vm747_vm11, %v1403_v11, 0.0  ;;  %vm2813_vm15 = vmand %vm1842_vm3, %vm2812_vm14  ;;  %vm2819_vm3 = vnez %v2728_v29  ;;  %v916_v29 = vld [vmem:[#allocation3 + $0x20] sm:$0xff] }
 0x119   :  { %v828_v12 = vsel %vm2813_vm15, %v1405_v17, 0.0  ;;  %vm2818_vm13 = vmand %vm2816_vm12, %vm2817_vm6 }
 0x11a   :  { %v829_v50 = vsel %vm2818_vm13, %v1411_v15, 0.0  ;;  %vm2821_vm5 = vmand %vm2819_vm3, %vm2820_vm0 }
 0x11b   :  { %v830_v22 = vsel %vm2821_vm5, %v1413_v25, 0.0  ;;  %vm2823_vm10 = vmmov %vm2822_vm2 }
 0x11c   :  { %805 = vadd.xlane.f32.xlu0 %v778_v8  ;;  %851 = vadd.xlane.f32.xlu1 %v825_v44  ;;  %vm2824_vm4 = vmmov %vm2822_vm2  ;;  %v922_v8 = vld [vmem:[#allocation3 + $0x50] sm:$0xff] }
 0x11d   :  { %vm2825_vm8 = vmmov %vm2822_vm2 }
 0x11e   :  { %vm2826_vm9 = vmmov %vm2822_vm2 }
 0x11f   :  { %vm2827_vm11 = vmmov %vm2822_vm2 }
 0x120   :  { %853 = vadd.xlane.f32.xlu0 %v826_v23  ;;  %807 = vadd.xlane.f32.xlu1 %v779_v38  ;;  %vm2828_vm14 = vmmov %vm2822_vm2 }
 0x121   :  { %vm2829_vm15 = vmmov %vm2822_vm2 }
 0x122   :  { %vm2830_vm1 = vmmov %vm2822_vm2 }
 0x123   :  { %vm2831_vm7 = vmmov %vm2830_vm1 }
 0x124   :  { %809 = vadd.xlane.f32.xlu0 %v780_v47  ;;  %855 = vadd.xlane.f32.xlu1 %v827_v53  ;;  %vm2832_vm12 = vmmov %vm2830_vm1  ;;  %v923_v47 = vld [vmem:[#allocation3 + $0x58] sm:$0xff] }
 0x125   :  { %vm2833_vm6 = vmmov %vm2830_vm1 }
 0x126   :  { %vm2834_vm13 = vmmov %vm2830_vm1 }
 0x127   :  { %vm2835_vm3 = vmmov %vm2830_vm1 }
 0x128   :  { %857 = vadd.xlane.f32.xlu0 %v828_v12  ;;  %811 = vadd.xlane.f32.xlu1 %v781_v2  ;;  %vm2836_vm0 = vmmov %vm2830_vm1 }
 0x129   :  { %vm2837_vm5 = vmmov %vm2836_vm0 }
 0x12c   :  { %813 = vadd.xlane.f32.xlu0 %v782_v21  ;;  %859 = vadd.xlane.f32.xlu1 %v829_v50 }
 0x130   :  { %861 = vadd.xlane.f32.xlu0 %v830_v22 }
 0x157   :  { %v947_v3 = vpop.xlane.xlu1 %946 }
 0x158   :  { %v977_v54 = vadd.f32 %v947_v3, %v913_v26  ;;  %v753_v26 = vld [vmem:[#allocation2 + $0x10] sm:$0xff] }
 0x159   :  { %v945_v52 = vpop.xlane.xlu0 %944 }
 0x15a   :  { %993 = vst.msk [vmem:[#allocation3 + $0x8] sm:$0xff] %vm2822_vm2, %v977_v54  ;;  %v976_v19 = vadd.f32 %v945_v52, %v912_v27  ;;  %v924_v52 = vld [vmem:[#allocation3 + $0x60] sm:$0xff]  ;;  %vm2838_vm2 = vmmov %vm2836_vm0 }
 0x15c   :  { %992 = vst.msk [vmem:[#allocation3] sm:$0xff] %vm2823_vm10, %v976_v19  ;;  %vm2839_vm10 = vmmov %vm2836_vm0 }
 0x15d   :  { %v951_v13 = vpop.xlane.xlu0 %950 }
 0x15e   :  { %v979_v60 = vadd.f32 %v951_v13, %v915_v28 }
 0x160   :  { %995 = vst.msk [vmem:[#allocation3 + $0x18] sm:$0xff] %vm2824_vm4, %v979_v60  ;;  %vm2840_vm4 = vmmov %vm2836_vm0 }
 0x161   :  { %v949_v24 = vpop.xlane.xlu0 %948  ;;  %v953_v20 = vpop.xlane.xlu1 %952  ;;  %v2444_v49 = vld [vmem:[#allocation3 + $0x8] sm:$0xff] }
 0x162   :  { %v978_v0 = vadd.f32 %v949_v24, %v914_v32  ;;  %v980_v14 = vadd.f32 %v953_v20, %v916_v29  ;;  %v1029_v41 = vmul.f32 1.442695, %v2444_v49  ;;  %v754_v29 = vld [vmem:[#allocation2 + $0x18] sm:$0xff] }
 0x163   :  { %v2439_v1 = vld [vmem:[#allocation3] sm:$0xff] }
 0x164   :  { %994 = vst.msk [vmem:[#allocation3 + $0x10] sm:$0xff] %vm2825_vm8, %v978_v0  ;;  %v1027_v45 = vmul.f32 1.442695, %v2439_v1  ;;  %vm2841_vm8 = vmmov %vm2836_vm0 }
 0x165   :  { %996 = vst.msk [vmem:[#allocation3 + $0x20] sm:$0xff] %vm2826_vm9, %v980_v14  ;;  %v955_v6 = vpop.xlane.xlu0 %954  ;;  %v957_v40 = vpop.xlane.xlu1 %956 }
 0x166   :  { %v981_v43 = vadd.f32 %v955_v6, %v917_v39  ;;  %v982_v63 = vadd.f32 %v957_v40, %v918_v42  ;;  %1414 = vpow2.f32 %v1027_v45  ;;  %v925_v42 = vld [vmem:[#allocation3 + $0x68] sm:$0xff]  ;;  %v755_v45 = vld [vmem:[#allocation2 + $0x20] sm:$0xff] }
 0x167   :  { %1416 = vpow2.f32 %v1029_v41  ;;  %v2453_v35 = vld [vmem:[#allocation3 + $0x18] sm:$0xff]  ;;  %v926_v41 = vld [vmem:[#allocation3 + $0x70] sm:$0xff] }
 0x168   :  { %997 = vst.msk [vmem:[#allocation3 + $0x28] sm:$0xff] %vm2827_vm11, %v981_v43  ;;  %v1033_v21 = vmul.f32 1.442695, %v2453_v35  ;;  %vm2842_vm11 = vmmov %vm2836_vm0 }
 0x169   :  { %998 = vst.msk [vmem:[#allocation3 + $0x30] sm:$0xff] %vm2828_vm14, %v982_v63  ;;  %v959_v5 = vpop.xlane.xlu0 %958  ;;  %v961_v48 = vpop.xlane.xlu1 %960  ;;  %vm2843_vm14 = vmmov %vm2836_vm0 }
 0x16a   :  { %v983_v61 = vadd.f32 %v959_v5, %v919_v4  ;;  %v984_v58 = vadd.f32 %v961_v48, %v920_v56 }
 0x16b   :  { %v2448_v18 = vld [vmem:[#allocation3 + $0x10] sm:$0xff] }
 0x16c   :  { %999 = vst.msk [vmem:[#allocation3 + $0x38] sm:$0xff] %vm2829_vm15, %v983_v61  ;;  %v1031_v53 = vmul.f32 1.442695, %v2448_v18  ;;  %v2458_v60 = vld [vmem:[#allocation3 + $0x20] sm:$0xff] }
 0x16d   :  { %1000 = vst.msk [vmem:[#allocation3 + $0x40] sm:$0xff] %vm2830_vm1, %v984_v58  ;;  %v963_v46 = vpop.xlane.xlu0 %962  ;;  %v784_v10 = vpop.xlane.xlu1 %783  ;;  %v1035_v6 = vmul.f32 1.442695, %v2458_v60  ;;  %vm2844_vm1 = vmmov %vm2836_vm0 }
 0x16e   :  { %v985_v62 = vadd.f32 %v963_v46, %v921_v59  ;;  %1418 = vpow2.f32 %v1031_v53 }
 0x16f   :  { %1420 = vpow2.f32 %v1033_v21  ;;  %v2463_v63 = vld [vmem:[#allocation3 + $0x28] sm:$0xff] }
 0x170   :  { %1001 = vst.msk [vmem:[#allocation3 + $0x48] sm:$0xff] %vm2831_vm7, %v985_v62  ;;  %v1037_v48 = vmul.f32 1.442695, %v2463_v63  ;;  %vm2845_vm7 = vmmov %vm2836_vm0 }
 0x171   :  { %v786_v55 = vpop.xlane.xlu0 %785  ;;  %v832_v7 = vpop.xlane.xlu1 %831 }
 0x172   :  { %v863_v51 = vadd.f32 %v832_v7, %v784_v10 }
 0x173   :  { %v1415_v50 = vpop.eup %1414 }
 0x174   :  { %v879_v44 = vadd.f32 %v863_v51, %v751_v9  ;;  %v1417_v13 = vpop.eup %1416  ;;  %v2468_v51 = vld [vmem:[#allocation3 + $0x30] sm:$0xff] }
 0x175   :  { %v834_v23 = vpop.xlane.xlu0 %833  ;;  %v965_v38 = vpop.xlane.xlu1 %964 }
 0x176   :  { %896 = vst.msk [vmem:[#allocation2] sm:$0xff] %vm2832_vm12, %v879_v44  ;;  %v864_v11 = vadd.f32 %v834_v23, %v786_v55  ;;  %v986_v17 = vadd.f32 %v965_v38, %v922_v8  ;;  %v756_v44 = vld [vmem:[#allocation2 + $0x28] sm:$0xff]  ;;  %v111_v38 = vld [vmem:[%s2683_s4] sm:$0xff]  ;;  %vm2846_vm12 = vmmov %vm2836_vm0 }
 0x178   :  { %v880_v57 = vadd.f32 %v864_v11, %v752_v16  ;;  %1002 = vst.msk [vmem:[#allocation3 + $0x50] sm:$0xff] %vm2833_vm6, %v986_v17 }
 0x179   :  { %v967_v12 = vpop.xlane.xlu0 %966  ;;  %v788_v2 = vpop.xlane.xlu1 %787 }
 0x17a   :  { %897 = vst.msk [vmem:[#allocation2 + $0x8] sm:$0xff] %vm2834_vm13, %v880_v57  ;;  %v987_v15 = vadd.f32 %v967_v12, %v923_v47  ;;  %v927_v57 = vld [vmem:[#allocation3 + $0x78] sm:$0xff]  ;;  %v1039_v12 = vmul.f32 1.442695, %v2468_v51  ;;  %vm2847_vm13 = vmmov %vm2836_vm0 }
 0x17b   :  { %v1419_v61 = vpop.eup %1418 }
 0x17c   :  { %1003 = vst.msk [vmem:[#allocation3 + $0x58] sm:$0xff] %vm2835_vm3, %v987_v15  ;;  %v1421_v7 = vpop.eup %1420 }
 0x17d   :  { %v1059_v25 = vld [vmem:[#allocation2] sm:$0xff]  ;;  %v790_v22 = vpop.xlane.xlu0 %789  ;;  %v836_v3 = vpop.xlane.xlu1 %835 }
 0x17e   :  { %v1075_v27 = vadd.f32 %v1415_v50, %v1059_v25  ;;  %v865_v54 = vadd.f32 %v836_v3, %v788_v2  ;;  %v1478_v50 = vld [vmem:[%s2682_s3] sm:$0xff]  ;;  %v2479_v25 = vld [vmem:[#allocation3 + $0x38] sm:$0xff]  ;;  %v112_v3 = vld [vmem:[%s2683_s4 + $0x8] sm:$0xff] }
 0x17f   :  { %vm1155_vm9 = vcmp.eq.s32.totalorder %v1478_v50, %v111_v38  ;;  %v1481_v50 = vld [vmem:[%s2682_s3 + $0x18] sm:$0xff] }
 0x180   :  { %v1091_v19 = vadd.f32 1e-08, %v1075_v27  ;;  %v881_v28 = vadd.f32 %v865_v54, %v753_v26 }
 0x181   :  { %v1060_v32 = vld [vmem:[#allocation2 + $0x8] sm:$0xff]  ;;  %v838_v24 = vpop.xlane.xlu0 %837  ;;  %v969_v20 = vpop.xlane.xlu1 %968 }
 0x182   :  { %1422 = vlog2.f32 %v1091_v19  ;;  %v1076_v0 = vadd.f32 %v1417_v13, %v1060_v32  ;;  %898 = vst.msk [vmem:[#allocation2 + $0x10] sm:$0xff] %vm2836_vm0, %v881_v28  ;;  %v866_v14 = vadd.f32 %v838_v24, %v790_v22  ;;  %v988_v39 = vadd.f32 %v969_v20, %v924_v52  ;;  %v2487_v28 = vld [vmem:[#allocation3 + $0x40] sm:$0xff]  ;;  %v1479_v24 = vld [vmem:[%s2682_s3 + $0x8] sm:$0xff] }
 0x183   :  { %v1041_v19 = vmul.f32 1.442695, %v2479_v25  ;;  %vm1156_vm15 = vcmp.eq.s32.totalorder %v1479_v24, %v112_v3 }
 0x184   :  { %v1092_v40 = vadd.f32 1e-08, %v1076_v0  ;;  %v882_v43 = vadd.f32 %v866_v14, %v754_v29  ;;  %1004 = vst.msk [vmem:[#allocation3 + $0x60] sm:$0xff] %vm2837_vm5, %v988_v39  ;;  %v757_v0 = vld [vmem:[#allocation2 + $0x30] sm:$0xff]  ;;  %vm2848_vm5 = vmmov %vm2836_vm0 }
 0x185   :  { %v971_v4 = vpop.xlane.xlu0 %970  ;;  %v792_v56 = vpop.xlane.xlu1 %791 }
 0x186   :  { %1424 = vlog2.f32 %v1092_v40  ;;  %899 = vst.msk [vmem:[#allocation2 + $0x18] sm:$0xff] %vm2838_vm2, %v882_v43  ;;  %v989_v5 = vadd.f32 %v971_v4, %v925_v42  ;;  %v1043_v40 = vmul.f32 1.442695, %v2487_v28  ;;  %v2499_v43 = vld [vmem:[#allocation3 + $0x48] sm:$0xff]  ;;  %vm2849_vm2 = vmmov %vm2836_vm0 }
 0x187   :  { %1426 = vpow2.f32 %v1035_v6 }
 0x188   :  { %1005 = vst.msk [vmem:[#allocation3 + $0x68] sm:$0xff] %vm2839_vm10, %v989_v5  ;;  %1428 = vpow2.f32 %v1037_v48  ;;  %vm2850_vm10 = vmmov %vm2836_vm0 }
 0x189   :  { %v1061_v58 = vld [vmem:[#allocation2 + $0x10] sm:$0xff]  ;;  %v794_v59 = vpop.xlane.xlu0 %793  ;;  %v840_v46 = vpop.xlane.xlu1 %839 }
 0x18a   :  { %v1077_v10 = vadd.f32 %v1419_v61, %v1061_v58  ;;  %v867_v62 = vadd.f32 %v840_v46, %v792_v56  ;;  %v758_v58 = vld [vmem:[#allocation2 + $0x38] sm:$0xff] }
 0x18c   :  { %v1093_v55 = vadd.f32 1e-08, %v1077_v10  ;;  %v883_v9 = vadd.f32 %v867_v62, %v755_v45  ;;  %v113_v45 = vld [vmem:[%s2683_s4 + $0x10] sm:$0xff] }
 0x18d   :  { %v1062_v8 = vld [vmem:[#allocation2 + $0x18] sm:$0xff]  ;;  %v842_v16 = vpop.xlane.xlu0 %841  ;;  %v973_v23 = vpop.xlane.xlu1 %972 }
 0x18e   :  { %1430 = vlog2.f32 %v1093_v55  ;;  %v1078_v11 = vadd.f32 %v1421_v7, %v1062_v8  ;;  %900 = vst.msk [vmem:[#allocation2 + $0x20] sm:$0xff] %vm2840_vm4, %v883_v9  ;;  %v868_v17 = vadd.f32 %v842_v16, %v794_v59  ;;  %v990_v47 = vadd.f32 %v973_v23, %v926_v41  ;;  %v2510_v55 = vld [vmem:[#allocation3 + $0x50] sm:$0xff]  ;;  %v759_v23 = vld [vmem:[#allocation2 + $0x40] sm:$0xff] }
 0x18f   :  { %v1423_v53 = vpop.eup %1422  ;;  %v1045_v41 = vmul.f32 1.442695, %v2499_v43 }
 0x190   :  { %v1108_v2 = vmul.f32 0.6931472, %v1423_v53  ;;  %v1094_v15 = vadd.f32 1e-08, %v1078_v11  ;;  %v884_v21 = vadd.f32 %v868_v17, %v756_v44  ;;  %1006 = vst.msk [vmem:[#allocation3 + $0x70] sm:$0xff] %vm2841_vm8, %v990_v47  ;;  %v1480_v44 = vld [vmem:[%s2682_s3 + $0x10] sm:$0xff]  ;;  %vm2851_vm8 = vmmov %vm2836_vm0 }
 0x191   :  { %v975_v22 = vpop.xlane.xlu0 %974  ;;  %v796_v26 = vpop.xlane.xlu1 %795  ;;  %vm1157_vm6 = vcmp.eq.s32.totalorder %v1480_v44, %v113_v45  ;;  %v114_v11 = vld [vmem:[%s2683_s4 + $0x18] sm:$0xff] }
 0x192   :  { %v1139_v27 = vsub.f32 %v1108_v2, %v2439_v1  ;;  %1432 = vlog2.f32 %v1094_v15  ;;  %901 = vst.msk [vmem:[#allocation2 + $0x28] sm:$0xff] %vm2842_vm11, %v884_v21  ;;  %v991_v54 = vadd.f32 %v975_v22, %v927_v57  ;;  %v1047_v57 = vmul.f32 1.442695, %v2510_v55  ;;  %v2524_v22 = vld [vmem:[#allocation3 + $0x58] sm:$0xff]  ;;  %vm2852_vm11 = vmmov %vm2836_vm0 }
 0x193   :  { %v1425_v52 = vpop.eup %1424  ;;  %1434 = vpow2.f32 %v1039_v12  ;;  %vm1158_vm3 = vcmp.eq.s32.totalorder %v1481_v50, %v114_v11 }
 0x194   :  { %v1171_v13 = vsel %vm1155_vm9, %v1139_v27, 0.0  ;;  %v1110_v32 = vmul.f32 0.6931472, %v1425_v52  ;;  %1007 = vst.msk [vmem:[#allocation3 + $0x78] sm:$0xff] %vm2843_vm14, %v991_v54  ;;  %v1427_v29 = vpop.eup %1426  ;;  %1436 = vpow2.f32 %v1041_v19  ;;  %vm2853_vm14 = vmmov %vm2836_vm0 }
 0x195   :  { %1187 = vst.msk [vmem:[%s2686_s7] sm:$0xff] %vm2844_vm1, %v1171_v13  ;;  %v1063_v1 = vld [vmem:[#allocation2 + $0x20] sm:$0xff]  ;;  %v798_v20 = vpop.xlane.xlu0 %797  ;;  %v844_v14 = vpop.xlane.xlu1 %843  ;;  %v1049_v13 = vmul.f32 1.442695, %v2524_v22  ;;  %vm2855_vm1 = vmmov %vm2836_vm0 }
 0x196   :  { %v1140_v39 = vsub.f32 %v1110_v32, %v2444_v49  ;;  %v1079_v42 = vadd.f32 %v1427_v29, %v1063_v1  ;;  %v869_v6 = vadd.f32 %v844_v14, %v796_v26  ;;  %v1429_v48 = vpop.eup %1428  ;;  %v760_v26 = vld [vmem:[#allocation2 + $0x48] sm:$0xff]  ;;  %v2533_v29 = vld [vmem:[#allocation3 + $0x60] sm:$0xff]  ;;  %v761_v14 = vld [vmem:[#allocation2 + $0x50] sm:$0xff] }
 0x198   :  { %v1172_v4 = vsel %vm1156_vm15, %v1140_v39, 0.0  ;;  %v1095_v56 = vadd.f32 1e-08, %v1079_v42  ;;  %v885_v5 = vadd.f32 %v869_v6, %v757_v0  ;;  %v115_v42 = vld [vmem:[%s2683_s4 + $0x20] sm:$0xff]  ;;  %vm2854_vm15 = vmmov %vm2836_vm0 }
 0x199   :  { %1188 = vst.msk [vmem:[%s2686_s7 + $0x8] sm:$0xff] %vm2845_vm7, %v1172_v4  ;;  %v1064_v61 = vld [vmem:[#allocation2 + $0x28] sm:$0xff]  ;;  %v846_v59 = vpop.xlane.xlu0 %845  ;;  %v800_v49 = vpop.xlane.xlu1 %799 }
 0x19a   :  { %1438 = vlog2.f32 %v1095_v56  ;;  %v1080_v46 = vadd.f32 %v1429_v48, %v1064_v61  ;;  %902 = vst.msk [vmem:[#allocation2 + $0x30] sm:$0xff] %vm2846_vm12, %v885_v5  ;;  %v870_v10 = vadd.f32 %v846_v59, %v798_v20  ;;  %v1051_v56 = vmul.f32 1.442695, %v2533_v29  ;;  %v2544_v5 = vld [vmem:[#allocation3 + $0x68] sm:$0xff]  ;;  %vm2856_vm12 = vmmov %vm2836_vm0 }
 0x19b   :  { %v1431_v62 = vpop.eup %1430  ;;  %1440 = vpow2.f32 %v1043_v40 }
 0x19c   :  { %v1112_v9 = vmul.f32 0.6931472, %v1431_v62  ;;  %v1096_v7 = vadd.f32 1e-08, %v1080_v46  ;;  %v886_v8 = vadd.f32 %v870_v10, %v758_v58  ;;  %v762_v46 = vld [vmem:[#allocation2 + $0x58] sm:$0xff] }
 0x19d   :  { %v802_v16 = vpop.xlane.xlu0 %801  ;;  %v848_v38 = vpop.xlane.xlu1 %847 }
 0x19e   :  { %v1141_v17 = vsub.f32 %v1112_v9, %v2448_v18  ;;  %1442 = vlog2.f32 %v1096_v7  ;;  %903 = vst.msk [vmem:[#allocation2 + $0x38] sm:$0xff] %vm2847_vm13, %v886_v8  ;;  %v871_v47 = vadd.f32 %v848_v38, %v800_v49  ;;  %v1482_v49 = vld [vmem:[%s2682_s3 + $0x20] sm:$0xff]  ;;  %vm2857_vm13 = vmmov %vm2836_vm0 }
 0x19f   :  { %v1433_v53 = vpop.eup %1432  ;;  %1444 = vpow2.f32 %v1045_v41  ;;  %vm1159_vm4 = vcmp.eq.s32.totalorder %v1482_v49, %v115_v42  ;;  %v116_v41 = vld [vmem:[%s2683_s4 + $0x28] sm:$0xff] }
 0x1a0   :  { %v1173_v12 = vsel %vm1157_vm6, %v1141_v17, 0.0  ;;  %v1114_v2 = vmul.f32 0.6931472, %v1433_v53  ;;  %v887_v15 = vadd.f32 %v871_v47, %v759_v23  ;;  %v1435_v21 = vpop.eup %1434  ;;  %1446 = vpow2.f32 %v1047_v57  ;;  %v1483_v53 = vld [vmem:[%s2682_s3 + $0x28] sm:$0xff] }
 0x1a1   :  { %1189 = vst.msk [vmem:[%s2686_s7 + $0x10] sm:$0xff] %vm2836_vm0, %v1173_v12  ;;  %v1065_v18 = vld [vmem:[#allocation2 + $0x30] sm:$0xff]  ;;  %v850_v3 = vpop.xlane.xlu0 %849  ;;  %v804_v27 = vpop.xlane.xlu1 %803  ;;  %vm1160_vm9 = vcmp.eq.s32.totalorder %v1483_v53, %v116_v41 }
 0x1a2   :  { %v1142_v54 = vsub.f32 %v1114_v2, %v2453_v35  ;;  %v1081_v52 = vadd.f32 %v1435_v21, %v1065_v18  ;;  %904 = vst.msk [vmem:[#allocation2 + $0x40] sm:$0xff] %vm2848_vm5, %v887_v15  ;;  %v872_v19 = vadd.f32 %v850_v3, %v802_v16  ;;  %v1437_v20 = vpop.eup %1436  ;;  %v1053_v16 = vmul.f32 1.442695, %v2544_v5  ;;  %v763_v2 = vld [vmem:[#allocation2 + $0x60] sm:$0xff]  ;;  %vm2859_vm5 = vmmov %vm2855_vm1 }
 0x1a4   :  { %v1174_v32 = vsel %vm1158_vm3, %v1142_v54, 0.0  ;;  %v1097_v24 = vadd.f32 1e-08, %v1081_v52  ;;  %v888_v1 = vadd.f32 %v872_v19, %v760_v26  ;;  %v2567_v54 = vld [vmem:[#allocation3 + $0x78] sm:$0xff]  ;;  %vm2858_vm3 = vmmov %vm2836_vm0 }
 0x1a5   :  { %1190 = vst.msk [vmem:[%s2686_s7 + $0x18] sm:$0xff] %vm2849_vm2, %v1174_v32  ;;  %v1066_v0 = vld [vmem:[#allocation2 + $0x38] sm:$0xff]  ;;  %v806_v35 = vpop.xlane.xlu0 %805  ;;  %v852_v39 = vpop.xlane.xlu1 %851  ;;  %vm2860_vm2 = vmmov %vm2855_vm1 }
 0x1a6   :  { %1448 = vlog2.f32 %v1097_v24  ;;  %v1082_v6 = vadd.f32 %v1437_v20, %v1066_v0  ;;  %905 = vst.msk [vmem:[#allocation2 + $0x48] sm:$0xff] %vm2850_vm10, %v888_v1  ;;  %v873_v40 = vadd.f32 %v852_v39, %v804_v27  ;;  %v117_v1 = vld [vmem:[%s2683_s4 + $0x30] sm:$0xff] }
 0x1a7   :  { %v1439_v4 = vpop.eup %1438  ;;  %1450 = vpow2.f32 %v1049_v13  ;;  %v764_v13 = vld [vmem:[#allocation2 + $0x68] sm:$0xff] }
 0x1a8   :  { %v1116_v48 = vmul.f32 0.6931472, %v1439_v4  ;;  %v1098_v61 = vadd.f32 1e-08, %v1082_v6  ;;  %v889_v58 = vadd.f32 %v873_v40, %v761_v14  ;;  %v1441_v59 = vpop.eup %1440  ;;  %v1057_v14 = vmul.f32 1.442695, %v2567_v54 }
 0x1a9   :  { %v1067_v45 = vld [vmem:[#allocation2 + $0x40] sm:$0xff]  ;;  %v854_v10 = vpop.xlane.xlu0 %853  ;;  %v808_v62 = vpop.xlane.xlu1 %807  ;;  %v1484_v4 = vld [vmem:[%s2682_s3 + $0x30] sm:$0xff] }
 0x1aa   :  { %v1143_v9 = vsub.f32 %v1116_v48, %v2458_v60  ;;  %1452 = vlog2.f32 %v1098_v61  ;;  %v1083_v7 = vadd.f32 %v1441_v59, %v1067_v45  ;;  %906 = vst.msk [vmem:[#allocation2 + $0x50] sm:$0xff] %vm2851_vm8, %v889_v58  ;;  %v874_v8 = vadd.f32 %v854_v10, %v806_v35  ;;  %v2562_v60 = vld [vmem:[#allocation3 + $0x70] sm:$0xff]  ;;  %v118_v59 = vld [vmem:[%s2683_s4 + $0x38] sm:$0xff] }
 0x1ab   :  { %v1443_v44 = vpop.eup %1442  ;;  %1454 = vpow2.f32 %v1051_v56  ;;  %v1055_v27 = vmul.f32 1.442695, %v2562_v60  ;;  %vm1161_vm7 = vcmp.eq.s32.totalorder %v1484_v4, %v117_v1  ;;  %v765_v61 = vld [vmem:[#allocation2 + $0x70] sm:$0xff] }
 0x1ac   :  { %v1175_v23 = vsel %vm1159_vm4, %v1143_v9, 0.0  ;;  %v1118_v38 = vmul.f32 0.6931472, %v1443_v44  ;;  %v1099_v11 = vadd.f32 1e-08, %v1083_v7  ;;  %v890_v17 = vadd.f32 %v874_v8, %v762_v46  ;;  %v1445_v47 = vpop.eup %1444  ;;  %v1485_v44 = vld [vmem:[%s2682_s3 + $0x38] sm:$0xff]  ;;  %vm2861_vm4 = vmmov %vm2855_vm1 }
 0x1ad   :  { %1191 = vst.msk [vmem:[%s2686_s7 + $0x20] sm:$0xff] %vm2852_vm11, %v1175_v23  ;;  %v1068_v57 = vld [vmem:[#allocation2 + $0x48] sm:$0xff]  ;;  %v810_v12 = vpop.xlane.xlu0 %809  ;;  %v856_v15 = vpop.xlane.xlu1 %855  ;;  %vm1162_vm6 = vcmp.eq.s32.totalorder %v1485_v44, %v118_v59 }
 0x1ae   :  { %v1144_v21 = vsub.f32 %v1118_v38, %v2463_v63  ;;  %1456 = vlog2.f32 %v1099_v11  ;;  %v1084_v50 = vadd.f32 %v1445_v47, %v1068_v57  ;;  %907 = vst.msk [vmem:[#allocation2 + $0x58] sm:$0xff] %vm2853_vm14, %v890_v17  ;;  %v875_v18 = vadd.f32 %v856_v15, %v808_v62  ;;  %v1447_v26 = vpop.eup %1446  ;;  %v119_v38 = vld [vmem:[%s2683_s4 + $0x40] sm:$0xff]  ;;  %vm2863_vm14 = vmmov %vm2855_vm1 }
 0x1af   :  { %1458 = vpow2.f32 %v1053_v16  ;;  %v766_v16 = vld [vmem:[#allocation2 + $0x78] sm:$0xff] }
 0x1b0   :  { %v1176_v3 = vsel %vm1160_vm9, %v1144_v21, 0.0  ;;  %v1100_v52 = vadd.f32 1e-08, %v1084_v50  ;;  %v891_v19 = vadd.f32 %v875_v18, %v763_v2  ;;  %v1486_v50 = vld [vmem:[%s2682_s3 + $0x40] sm:$0xff]  ;;  %v120_v18 = vld [vmem:[%s2683_s4 + $0x48] sm:$0xff]  ;;  %vm2862_vm9 = vmmov %vm2855_vm1 }
 0x1b1   :  { %1192 = vst.msk [vmem:[%s2686_s7 + $0x28] sm:$0xff] %vm2854_vm15, %v1176_v3  ;;  %v1069_v63 = vld [vmem:[#allocation2 + $0x50] sm:$0xff]  ;;  %v858_v32 = vpop.xlane.xlu0 %857  ;;  %v812_v24 = vpop.xlane.xlu1 %811  ;;  %vm1163_vm0 = vcmp.eq.s32.totalorder %v1486_v50, %v119_v38 }
 0x1b2   :  { %1460 = vlog2.f32 %v1100_v52  ;;  %v1085_v20 = vadd.f32 %v1447_v26, %v1069_v63  ;;  %908 = vst.msk [vmem:[#allocation2 + $0x60] sm:$0xff] %vm2855_vm1, %v891_v19  ;;  %v876_v0 = vadd.f32 %v858_v32, %v810_v12  ;;  %v1487_v32 = vld [vmem:[%s2682_s3 + $0x48] sm:$0xff] }
 0x1b3   :  { %v1449_v35 = vpop.eup %1448  ;;  %1462 = vpow2.f32 %v1055_v27  ;;  %vm1164_vm10 = vcmp.eq.s32.totalorder %v1487_v32, %v120_v18 }
 0x1b4   :  { %v1120_v39 = vmul.f32 0.6931472, %v1449_v35  ;;  %v1101_v42 = vadd.f32 1e-08, %v1085_v20  ;;  %v892_v6 = vadd.f32 %v876_v0, %v764_v13  ;;  %v1451_v40 = vpop.eup %1450 }
 0x1b5   :  { %v1070_v56 = vld [vmem:[#allocation2 + $0x58] sm:$0xff]  ;;  %v814_v48 = vpop.xlane.xlu0 %813  ;;  %v860_v58 = vpop.xlane.xlu1 %859 }
 0x1b6   :  { %v1145_v49 = vsub.f32 %v1120_v39, %v2468_v51  ;;  %1464 = vlog2.f32 %v1101_v42  ;;  %v1086_v45 = vadd.f32 %v1451_v40, %v1070_v56  ;;  %909 = vst.msk [vmem:[#allocation2 + $0x68] sm:$0xff] %vm2856_vm12, %v892_v6  ;;  %v877_v46 = vadd.f32 %v860_v58, %v812_v24  ;;  %v121_v24 = vld [vmem:[%s2683_s4 + $0x50] sm:$0xff] }
 0x1b7   :  { %v1453_v10 = vpop.eup %1452  ;;  %1466 = vpow2.f32 %v1057_v14  ;;  %v1488_v6 = vld [vmem:[%s2682_s3 + $0x50] sm:$0xff]  ;;  %vm2865_vm12 = vcmp.eq.s32.totalorder %v1628_v33, %v1633_v34 }
 0x1b8   :  { %v1455_v62 = vpop.eup %1454  ;;  %v1177_v41 = vsel %vm1161_vm7, %v1145_v49, 0.0  ;;  %v1122_v9 = vmul.f32 0.6931472, %v1453_v10  ;;  %v1102_v7 = vadd.f32 1e-08, %v1086_v45  ;;  %v893_v8 = vadd.f32 %v877_v46, %v765_v61  ;;  %v1489_v49 = vld [vmem:[%s2682_s3 + $0x58] sm:$0xff]  ;;  %vm2864_vm7 = vmmov %vm2855_vm1 }
 0x1b9   :  { %1193 = vst.msk [vmem:[%s2686_s7 + $0x30] sm:$0xff] %vm2857_vm13, %v1177_v41  ;;  %v1071_v51 = vld [vmem:[#allocation2 + $0x60] sm:$0xff]  ;;  %v862_v23 = vpop.xlane.xlu0 %861  ;;  %vm1165_vm8 = vcmp.eq.s32.totalorder %v1488_v6, %v121_v24  ;;  %vm2867_vm13 = vcmp.eq.s32.totalorder %v1613_v30, %v1618_v31 }
 0x1ba   :  { %v1146_v11 = vsub.f32 %v1122_v9, %v2479_v25  ;;  %1468 = vlog2.f32 %v1102_v7  ;;  %v1087_v17 = vadd.f32 %v1455_v62, %v1071_v51  ;;  %910 = vst.msk [vmem:[#allocation2 + $0x70] sm:$0xff] %vm2858_vm3, %v893_v8  ;;  %v878_v47 = vadd.f32 %v862_v23, %v814_v48  ;;  %v1490_v41 = vld [vmem:[%s2682_s3 + $0x60] sm:$0xff]  ;;  %vm2868_vm3 = vmmov %vm2855_vm1 }
 0x1bb   :  { %v1457_v53 = vpop.eup %1456 }
 0x1bc   :  { %v1459_v57 = vpop.eup %1458  ;;  %v1178_v12 = vsel %vm1162_vm6, %v1146_v11, 0.0  ;;  %v1124_v2 = vmul.f32 0.6931472, %v1457_v53  ;;  %v1103_v15 = vadd.f32 1e-08, %v1087_v17  ;;  %v894_v21 = vadd.f32 %v878_v47, %v766_v16  ;;  %vm2866_vm6 = vmmov %vm2855_vm1 }
 0x1bd   :  { %1194 = vst.msk [vmem:[%s2686_s7 + $0x38] sm:$0xff] %vm2859_vm5, %v1178_v12  ;;  %v1072_v25 = vld [vmem:[#allocation2 + $0x68] sm:$0xff]  ;;  %vm2870_vm5 = vmmov %vm2855_vm1 }
 0x1be   :  { %v1147_v26 = vsub.f32 %v1124_v2, %v2487_v28  ;;  %1470 = vlog2.f32 %v1103_v15  ;;  %v1088_v3 = vadd.f32 %v1459_v57, %v1072_v25  ;;  %911 = vst.msk [vmem:[#allocation2 + $0x78] sm:$0xff] %vm2860_vm2, %v894_v21 }
 0x1bf   :  { %v1461_v27 = vpop.eup %1460 }
 0x1c0   :  { %v1179_v52 = vsel %vm1163_vm0, %v1147_v26, 0.0  ;;  %v1126_v19 = vmul.f32 0.6931472, %v1461_v27  ;;  %v1104_v63 = vadd.f32 1e-08, %v1088_v3  ;;  %v1463_v13 = vpop.eup %1462  ;;  %vm2869_vm0 = vcmp.eq.s32.totalorder %v1642_v36, %v1647_v37 }
 0x1c1   :  { %1195 = vst.msk [vmem:[%s2686_s7 + $0x40] sm:$0xff] %vm2861_vm4, %v1179_v52  ;;  %v1073_v28 = vld [vmem:[#allocation2 + $0x70] sm:$0xff] }
 0x1c2   :  { %v1148_v1 = vsub.f32 %v1126_v19, %v2499_v43  ;;  %1472 = vlog2.f32 %v1104_v63  ;;  %v1089_v20 = vadd.f32 %v1463_v13, %v1073_v28  ;;  %v122_v43 = vld [vmem:[%s2683_s4 + $0x58] sm:$0xff] }
 0x1c3   :  { %v1465_v0 = vpop.eup %1464  ;;  %vm1166_vm11 = vcmp.eq.s32.totalorder %v1489_v49, %v122_v43 }
 0x1c4   :  { %v1467_v35 = vpop.eup %1466  ;;  %v1180_v14 = vsel %vm1164_vm10, %v1148_v1, 0.0  ;;  %v1128_v39 = vmul.f32 0.6931472, %v1465_v0  ;;  %v1105_v42 = vadd.f32 1e-08, %v1089_v20 }
 0x1c5   :  { %1196 = vst.msk [vmem:[%s2686_s7 + $0x48] sm:$0xff] %vm2862_vm9, %v1180_v14  ;;  %v1074_v40 = vld [vmem:[#allocation2 + $0x78] sm:$0xff] }
 0x1c6   :  { %v1149_v4 = vsub.f32 %v1128_v39, %v2510_v55  ;;  %1474 = vlog2.f32 %v1105_v42  ;;  %v1090_v56 = vadd.f32 %v1467_v35, %v1074_v40  ;;  %v123_v55 = vld [vmem:[%s2683_s4 + $0x60] sm:$0xff] }
 0x1c7   :  { %v1469_v48 = vpop.eup %1468  ;;  %vm1167_vm15 = vcmp.eq.s32.totalorder %v1490_v41, %v123_v55 }
 0x1c8   :  { %v1181_v61 = vsel %vm1165_vm8, %v1149_v4, 0.0  ;;  %v1130_v58 = vmul.f32 0.6931472, %v1469_v48  ;;  %v1106_v59 = vadd.f32 1e-08, %v1090_v56 }
 0x1c9   :  { %1197 = vst.msk [vmem:[%s2686_s7 + $0x50] sm:$0xff] %vm2863_vm14, %v1181_v61 }
 0x1ca   :  { %v1150_v45 = vsub.f32 %v1130_v58, %v2524_v22  ;;  %1476 = vlog2.f32 %v1106_v59 }
 0x1cb   :  { %v1471_v46 = vpop.eup %1470 }
 0x1cc   :  { %v1182_v10 = vsel %vm1166_vm11, %v1150_v45, 0.0  ;;  %v1132_v62 = vmul.f32 0.6931472, %v1471_v46 }
 0x1cd   :  { %1198 = vst.msk [vmem:[%s2686_s7 + $0x58] sm:$0xff] %vm2855_vm1, %v1182_v10 }
 0x1ce   :  { %v1151_v9 = vsub.f32 %v1132_v62, %v2533_v29 }
 0x1cf   :  { %v1473_v7 = vpop.eup %1472 }
 0x1d0   :  { %v1183_v8 = vsel %vm1167_vm15, %v1151_v9, 0.0  ;;  %v1134_v44 = vmul.f32 0.6931472, %v1473_v7 }
 0x1d1   :  { %1199 = vst.msk [vmem:[%s2686_s7 + $0x60] sm:$0xff] %vm2864_vm7, %v1183_v8 }
 0x1d2   :  { %v1152_v22 = vsub.f32 %v1134_v44, %v2544_v5 }
 0x1d3   :  { %v1475_v51 = vpop.eup %1474 }
 0x1d4   :  { %v1184_v16 = vsel %vm2865_vm12, %v1152_v22, 0.0  ;;  %v1136_v23 = vmul.f32 0.6931472, %v1475_v51 }
 0x1d5   :  { %1200 = vst.msk [vmem:[%s2686_s7 + $0x68] sm:$0xff] %vm2866_vm6, %v1184_v16 }
 0x1d6   :  { %v1153_v29 = vsub.f32 %v1136_v23, %v2562_v60 }
 0x1d7   :  { %v1477_v38 = vpop.eup %1476 }
 0x1d8   :  { %v1185_v11 = vsel %vm2867_vm13, %v1153_v29, 0.0  ;;  %v1138_v17 = vmul.f32 0.6931472, %v1477_v38 }
 0x1d9   :  { %1201 = vst.msk [vmem:[%s2686_s7 + $0x70] sm:$0xff] %vm2868_vm3, %v1185_v11 }
 0x1da   :  { %v1154_v33 = vsub.f32 %v1138_v17, %v2567_v54 }
 0x1dc   :  { %v1186_v34 = vsel %vm2869_vm0, %v1154_v33, 0.0 }
 0x1dd   :  { %1202 = vst.msk [vmem:[%s2686_s7 + $0x78] sm:$0xff] %vm2870_vm5, %v1186_v34 }

</bundles_post_ra>
